<compile_context>
chip_gen: v6e
topology: v6e:2x2x1
jax: 0.10.0
libtpu: 0.0.40
codegen_flags: <defaults>
</compile_context>

<pallas_src>
import math
import functools

import jax
import jax.numpy as jnp
from jax.experimental import pallas as pl
from jax.experimental.pallas import tpu as pltpu


def _positional_encoding(seq_len, embedding_dim):
    pos = jnp.arange(seq_len, dtype=jnp.float32)[:, None]
    div = jnp.exp(jnp.arange(0, embedding_dim, 2, dtype=jnp.float32)
                  * (-math.log(10000.0) / embedding_dim))
    pe = jnp.zeros((seq_len, embedding_dim), jnp.float32)
    pe = pe.at[:, 0::2].set(jnp.sin(pos * div))
    pe = pe.at[:, 1::2].set(jnp.cos(pos * div))
    return pe


def _choose_tiling(batch, seq_len, target_rows=256):
    """Pick (teams-per-block TB, num grid blocks) so TB*S ~ target_rows and grid is even."""
    if batch <= 1:
        return 1, 1
    tb_cap = max(1, target_rows // seq_len)           # ~25 for S=10 (M ~ 256 on v6e/v7x)
    nblk = max(2, -(-batch // tb_cap))                # ceil-div, at least 2 blocks
    if nblk % 2:                                      # even grid -> both v7x TensorCores busy
        nblk += 1
    tb = -(-batch // nblk)
    return tb, nblk


# bias_stack row layout:
#  0: bq*scale  1: bk  2: bv  3: out_proj b  4: enc lin1 b  5: enc lin2 b  6: ffw2 b
#  7: norm1 g   8: norm1 b   9: norm2 g  10: norm2 b  11: final ln g  12: final ln b
def _team_transformer_kernel(idx_ref, table_ref, pe_ref, mask_ref,
                             w_ref, wf1_ref, wf2_ref,
                             bias_ref, bf1_ref, out_ref, *, num_heads):
    N = idx_ref.shape[1]                # TB * S tokens in this block
    C, E = table_ref.shape
    H = num_heads
    D = E // H
    cd = table_ref.dtype                # matmul operand dtype (bf16 by default)
    f32 = jnp.float32

    bias = bias_ref[...]                # (13, E) f32

    def layer_norm(x, g, b):            # eps matches nn.LayerNorm default
        mu = jnp.mean(x, axis=-1, keepdims=True)
        xc = x - mu
        var = jnp.mean(xc * xc, axis=-1, keepdims=True)
        return xc * jax.lax.rsqrt(var + 1e-5) * g + b

    # --- champion embedding lookup as one-hot @ table (gather -> MXU) ----------
    idx = idx_ref[0]                                                    # (N, 1) i32
    iota_c = jax.lax.broadcasted_iota(jnp.int32, (N, C), 1)
    onehot = jnp.where(idx == iota_c, 1.0, 0.0).astype(cd)              # (N, C)
    emb = jnp.dot(onehot, table_ref[...], preferred_element_type=f32)   # (N, E)

    # --- temporal position encoding (pre-tiled over TB teams; dropout = id) ----
    x0 = emb + pe_ref[...]                                              # (N, E) f32

    # --- TransformerEncoderLayer: self-attention block (post-norm) -------------
    x0c = x0.astype(cd)
    q = jnp.dot(x0c, w_ref[0], preferred_element_type=f32) + bias[0]    # scale pre-folded
    k = jnp.dot(x0c, w_ref[1], preferred_element_type=f32) + bias[1]
    v = jnp.dot(x0c, w_ref[2], preferred_element_type=f32) + bias[2]

    mask_add = mask_ref[...]            # (N, N) f32: 0 within a team, -1e30 across teams
    wo_t = w_ref[3]                                                     # (E, E) = Wo^T
    sa = jnp.zeros((N, E), f32) + bias[3]
    for h in range(H):                  # static, H small; each iter covers ALL TB teams
        sl = slice(h * D, (h + 1) * D)
        qh = q[:, sl].astype(cd)                                        # (N, D)
        kh = k[:, sl].astype(cd)
        vh = v[:, sl].astype(cd)
        s = jax.lax.dot_general(qh, kh, (((1,), (1,)), ((), ())),
                                preferred_element_type=f32)             # (N, N)
        s = s + mask_add                                                # block-diag per team
        s = s - jnp.max(s, axis=-1, keepdims=True)
        p = jnp.exp(s)                                                  # softmax in f32
        p = p * pl.reciprocal(jnp.sum(p, axis=-1, keepdims=True), approx=True)
        ctx = jnp.dot(p.astype(cd), vh, preferred_element_type=f32)     # (N, D)
        # fold this head's slice of the out-projection directly (no concat needed)
        sa = sa + jnp.dot(ctx.astype(cd), wo_t[sl, :], preferred_element_type=f32)

    x1 = layer_norm(x0 + sa, bias[7], bias[8])                          # norm1

    # --- TransformerEncoderLayer: FFN block (dim_feedforward == E) -------------
    h1 = jnp.maximum(
        jnp.dot(x1.astype(cd), w_ref[4], preferred_element_type=f32) + bias[4], 0.0)
    ff = jnp.dot(h1.astype(cd), w_ref[5], preferred_element_type=f32) + bias[5]
    x2 = layer_norm(x1 + ff, bias[9], bias[10])                         # transformer_output

    # --- outer feedforward: Linear(E,4E) -> ReLU -> Linear(4E,E) ----------------
    hf = jnp.maximum(
        jnp.dot(x2.astype(cd), wf1_ref[...], preferred_element_type=f32) + bf1_ref[...],
        0.0)                                                            # (N, 4E)
    ffw = jnp.dot(hf.astype(cd), wf2_ref[...], preferred_element_type=f32) + bias[6]

    # --- final LayerNorm(feedforward_output + transformer_output) --------------
    out_ref[0] = layer_norm(ffw + x2, bias[11], bias[12])


def team_composition_transformer(team_composition, params, *,
                                 compute_dtype=jnp.bfloat16):
    """Inference forward of TeamCompositionTransformer as a single Pallas kernel."""
    p = params
    idx = team_composition.astype(jnp.int32)
    B, S = idx.shape
    table = p["emb"]
    C, E = table.shape
    H = p["num_heads"]
    D = E // H
    scale = 1.0 / math.sqrt(D)

    # Module adds a fixed (1, sequence_length, E) PE buffer -> requires S == sequence_length.
    pe = _positional_encoding(S, E)

    TB, nblk = _choose_tiling(B, S)
    N = TB * S                              # tokens per grid block
    Bp = nblk * TB                          # padded batch

    # Clamp out-of-range ids (PyTorch embedding would raise; zero one-hot would be silent).
    idx = jnp.clip(idx, 0, C - 1)
    if Bp != B:
        idx = jnp.concatenate([idx, jnp.zeros((Bp - B, S), jnp.int32)], axis=0)
    idx_blocks = idx.reshape(nblk, N, 1)

    # Pre-tiled PE (covers the TB teams of one block) and block-diagonal additive mask.
    pe_tiled = jnp.tile(pe, (TB, 1))                                    # (N, E) f32
    team_id = jnp.repeat(jnp.arange(TB, dtype=jnp.int32), S)            # (N,)
    mask_add = jnp.where(team_id[:, None] == team_id[None, :],
                         0.0, -1e30).astype(jnp.float32)                # (N, N)

    Wq, Wk, Wv = jnp.split(p["in_proj_weight"], 3, axis=0)
    bq, bk, bv = jnp.split(p["in_proj_bias"], 3)

    # Fold the 1/sqrt(D) attention scale into Wq / bq; stack weights & biases.
    w_stack = jnp.stack([
        (Wq * scale).T, Wk.T, Wv.T,
        p["out_proj_w"].T, p["lin1_w"].T, p["lin2_w"].T,
    ]).astype(compute_dtype)                                            # (6, E, E)

    bias_stack = jnp.stack([
        bq * scale, bk, bv, p["out_proj_b"], p["lin1_b"], p["lin2_b"], p["ffw2_b"],
        p["norm1_g"], p["norm1_b"], p["norm2_g"], p["norm2_b"],
        p["normf_g"], p["normf_b"],
    ]).astype(jnp.float32)                                              # (13, E)

    wf1_t = p["ffw1_w"].T.astype(compute_dtype)                         # (E, 4E)
    wf2_t = p["ffw2_w"].T.astype(compute_dtype)                         # (4E, E)
    bf1 = p["ffw1_b"].reshape(1, 4 * E).astype(jnp.float32)

    def const_spec(shape):
        nd = len(shape)
        # Constant across grid steps -> single-buffered (no pointless double-buffer swap).
        return pl.BlockSpec(shape, lambda b, _nd=nd: (0,) * _nd,
                            pipeline_mode=pl.Buffered(1))

    kernel = functools.partial(_team_transformer_kernel, num_heads=H)

    out = pl.pallas_call(
        kernel,
        out_shape=jax.ShapeDtypeStruct((nblk, N, E), jnp.float32),
        grid=(nblk,),
        in_specs=[
            pl.BlockSpec((1, N, 1), lambda b: (b, 0, 0)),   # champion ids (TB teams / block)
            const_spec((C, E)),                             # embedding table
            const_spec((N, E)),                             # positional encoding (tiled)
            const_spec((N, N)),                             # block-diag additive attn mask
            const_spec((6, E, E)),                          # stacked ExE weights (T)
            const_spec((E, 4 * E)),                         # ffw linear1 weight (T)
            const_spec((4 * E, E)),                         # ffw linear2 weight (T)
            const_spec((13, E)),                            # stacked biases / LN params
            const_spec((1, 4 * E)),                         # ffw linear1 bias
        ],
        out_specs=pl.BlockSpec((1, N, E), lambda b: (b, 0, 0)),
        compiler_params=pltpu.CompilerParams(
            dimension_semantics=("parallel",),              # shard blocks across v7x TCs
        ),
    )(idx_blocks, table.astype(compute_dtype), pe_tiled, mask_add,
      w_stack, wf1_t, wf2_t, bias_stack, bf1)

    return out.reshape(Bp, S, E)[:B]


# ------------------------- pure-JAX reference (f32) -------------------------
def _layer_norm_ref(x, g, b, eps=1e-5):
    mu = jnp.mean(x, axis=-1, keepdims=True)
    var = jnp.mean((x - mu) ** 2, axis=-1, keepdims=True)
    return (x - mu) / jnp.sqrt(var + eps) * g + b


def reference(team_composition, params):
    p = params
    table = p["emb"]
    B, S = team_composition.shape
    C, E = table.shape
    H = p["num_heads"]
    D = E // H
    pe = _positional_encoding(S, E)
    x0 = table[team_composition] + pe[None]
    Wq, Wk, Wv = jnp.split(p["in_proj_weight"], 3, axis=0)
    bq, bk, bv = jnp.split(p["in_proj_bias"], 3)
    q = x0 @ Wq.T + bq
    k = x0 @ Wk.T + bk
    v = x0 @ Wv.T + bv
    qh = q.reshape(B, S, H, D).transpose(0, 2, 1, 3)
    kh = k.reshape(B, S, H, D).transpose(0, 2, 1, 3)
    vh = v.reshape(B, S, H, D).transpose(0, 2, 1, 3)
    scores = jnp.einsum("bhqd,bhkd->bhqk", qh, kh) / math.sqrt(D)
    attn = jax.nn.softmax(scores, axis=-1)
    ctx = jnp.einsum("bhqk,bhkd->bhqd", attn, vh).transpose(0, 2, 1, 3).reshape(B, S, E)
    sa = ctx @ p["out_proj_w"].T + p["out_proj_b"]
    x1 = _layer_norm_ref(x0 + sa, p["norm1_g"], p["norm1_b"])
    ff = jax.nn.relu(x1 @ p["lin1_w"].T + p["lin1_b"]) @ p["lin2_w"].T + p["lin2_b"]
    x2 = _layer_norm_ref(x1 + ff, p["norm2_g"], p["norm2_b"])
    ffw = jax.nn.relu(x2 @ p["ffw1_w"].T + p["ffw1_b"]) @ p["ffw2_w"].T + p["ffw2_b"]
    return _layer_norm_ref(ffw + x2, p["normf_g"], p["normf_b"])


def make_params(key, num_champions, embedding_dim, num_heads):
    E = embedding_dim
    ks = jax.random.split(key, 19)
    std = 1.0 / math.sqrt(E)

    def w(k, shape, s=std):
        return jax.random.normal(k, shape, jnp.float32) * s

    return {
        "num_heads": num_heads,
        "emb": jax.random.normal(ks[0], (num_champions, E), jnp.float32),
        "in_proj_weight": w(ks[1], (3 * E, E)),
        "in_proj_bias": w(ks[2], (3 * E,), 0.02),
        "out_proj_w": w(ks[3], (E, E)),
        "out_proj_b": w(ks[4], (E,), 0.02),
        "lin1_w": w(ks[5], (E, E)),
        "lin1_b": w(ks[6], (E,), 0.02),
        "lin2_w": w(ks[7], (E, E)),
        "lin2_b": w(ks[8], (E,), 0.02),
        "norm1_g": 1.0 + 0.1 * jax.random.normal(ks[9], (E,), jnp.float32),
        "norm1_b": 0.1 * jax.random.normal(ks[10], (E,), jnp.float32),
        "norm2_g": 1.0 + 0.1 * jax.random.normal(ks[11], (E,), jnp.float32),
        "norm2_b": 0.1 * jax.random.normal(ks[12], (E,), jnp.float32),
        "ffw1_w": w(ks[13], (4 * E, E)),
        "ffw1_b": w(ks[14], (4 * E,), 0.02),
        "ffw2_w": w(ks[15], (E, 4 * E), 1.0 / math.sqrt(4 * E)),
        "ffw2_b": w(ks[16], (E,), 0.02),
        "normf_g": 1.0 + 0.1 * jax.random.normal(ks[17], (E,), jnp.float32),
        "normf_b": 0.1 * jax.random.normal(ks[18], (E,), jnp.float32),
    }


if __name__ == "__main__":
    # S must equal the module's sequence_length (default 10) for the PE broadcast.
    B, S, E, H, C = 2, 10, 32, 4, 64
    root = jax.random.PRNGKey(0)
    kp, ki = jax.random.split(root)

    params = make_params(kp, C, E, H)
    team_composition = jax.random.randint(ki, (B, S), 0, C, dtype=jnp.int32)

    out = jax.block_until_ready(team_composition_transformer(team_composition, params))
    ref = reference(team_composition, params)
    assert out.shape == (B, S, E), out.shape
    # Tolerance accounts for bfloat16 MXU operands (f32 accumulation / softmax / LN).
    assert jnp.allclose(out, ref, rtol=0.0, atol=7.5e-2), float(jnp.max(jnp.abs(out - ref)))

    # Also exercise the multi-team-per-block path (TB > 1, padded/odd batch).
    B2 = 13
    tc2 = jax.random.randint(jax.random.PRNGKey(1), (B2, S), 0, C, dtype=jnp.int32)
    out2 = jax.block_until_ready(team_composition_transformer(tc2, params))
    ref2 = reference(tc2, params)
    assert out2.shape == (B2, S, E), out2.shape
    assert jnp.allclose(out2, ref2, rtol=0.0, atol=7.5e-2), float(jnp.max(jnp.abs(out2 - ref2)))

    print("KERNEL_OK")
</pallas_src>

<mosaic_0001>
module attributes {stable_mosaic.version = 11 : i64} {
  func.func @_team_transformer_kernel(%arg0: i32, %arg1: memref<1x10x1xi32, #tpu.memory_space<vmem>>, %arg2: memref<64x32xbf16, #tpu.memory_space<vmem>>, %arg3: memref<10x32xf32, #tpu.memory_space<vmem>>, %arg4: memref<10x10xf32, #tpu.memory_space<vmem>>, %arg5: memref<6x32x32xbf16, #tpu.memory_space<vmem>>, %arg6: memref<32x128xbf16, #tpu.memory_space<vmem>>, %arg7: memref<128x32xbf16, #tpu.memory_space<vmem>>, %arg8: memref<13x32xf32, #tpu.memory_space<vmem>>, %arg9: memref<1x128xf32, #tpu.memory_space<vmem>>, %arg10: memref<1x10x32xf32, #tpu.memory_space<vmem>>) attributes {dimension_semantics = [#tpu.dimension_semantics<parallel>], iteration_bounds = array<i64: 2>, scalar_prefetch = 0 : i64, scratch_operands = 0 : i64, tpu.core_type = #tpu.core_type<tc>, window_params = [{transform_indices = @transform_0, window_bounds = array<i64: 1, 10, 1>}, {pipeline_mode = #tpu.pipeline_mode<synchronous>, transform_indices = @transform_1, window_bounds = array<i64: 64, 32>}, {pipeline_mode = #tpu.pipeline_mode<synchronous>, transform_indices = @transform_2, window_bounds = array<i64: 10, 32>}, {pipeline_mode = #tpu.pipeline_mode<synchronous>, transform_indices = @transform_3, window_bounds = array<i64: 10, 10>}, {pipeline_mode = #tpu.pipeline_mode<synchronous>, transform_indices = @transform_4, window_bounds = array<i64: 6, 32, 32>}, {pipeline_mode = #tpu.pipeline_mode<synchronous>, transform_indices = @transform_5, window_bounds = array<i64: 32, 128>}, {pipeline_mode = #tpu.pipeline_mode<synchronous>, transform_indices = @transform_6, window_bounds = array<i64: 128, 32>}, {pipeline_mode = #tpu.pipeline_mode<synchronous>, transform_indices = @transform_7, window_bounds = array<i64: 13, 32>}, {pipeline_mode = #tpu.pipeline_mode<synchronous>, transform_indices = @transform_8, window_bounds = array<i64: 1, 128>}, {transform_indices = @transform_9, window_bounds = array<i64: 1, 10, 32>}]} {
    %c0 = arith.constant 0 : index
    %c0_0 = arith.constant 0 : index
    %0 = vector.load %arg8[%c0, %c0_0] : memref<13x32xf32, #tpu.memory_space<vmem>>, vector<13x32xf32>
    %c0_1 = arith.constant 0 : index
    %c0_2 = arith.constant 0 : index
    %c0_3 = arith.constant 0 : index
    %1 = vector.load %arg1[%c0_1, %c0_2, %c0_3] : memref<1x10x1xi32, #tpu.memory_space<vmem>>, vector<1x10x1xi32>
    %2 = vector.shape_cast %1 : vector<1x10x1xi32> to vector<10x1xi32>
    %3 = tpu.iota {dimensions = array<i32: 1>} : vector<10x64xi32>
    %4 = vector.broadcast %2 : vector<10x1xi32> to vector<10x64xi32>
    %5 = arith.cmpi eq, %4, %3 : vector<10x64xi32>
    %cst = arith.constant 1.000000e+00 : f32
    %cst_4 = arith.constant 0.000000e+00 : f32
    %6 = vector.broadcast %cst : f32 to vector<10x64xf32>
    %7 = vector.broadcast %cst_4 : f32 to vector<10x64xf32>
    %8 = arith.select %5, %6, %7 : vector<10x64xi1>, vector<10x64xf32>
    %9 = arith.truncf %8 : vector<10x64xf32> to vector<10x64xbf16>
    %c0_5 = arith.constant 0 : index
    %c0_6 = arith.constant 0 : index
    %10 = vector.load %arg2[%c0_5, %c0_6] : memref<64x32xbf16, #tpu.memory_space<vmem>>, vector<64x32xbf16>
    %cst_7 = arith.constant dense<0.000000e+00> : vector<10x32xf32>
    %11 = tpu.matmul %9, %10, %cst_7 {dimension_numbers = #tpu.dot_dimension_numbers<[1], [0], [0], [1], [0, 0, 1, 1], [], []>} : vector<10x64xbf16>, vector<64x32xbf16>, vector<10x32xf32> -> vector<10x32xf32>
    %c0_8 = arith.constant 0 : index
    %c0_9 = arith.constant 0 : index
    %12 = vector.load %arg3[%c0_8, %c0_9] : memref<10x32xf32, #tpu.memory_space<vmem>>, vector<10x32xf32>
    %13 = arith.addf %11, %12 : vector<10x32xf32>
    %14 = arith.truncf %13 : vector<10x32xf32> to vector<10x32xbf16>
    %c0_10 = arith.constant 0 : index
    %c0_11 = arith.constant 0 : index
    %c0_12 = arith.constant 0 : index
    %15 = vector.load %arg5[%c0_10, %c0_11, %c0_12] : memref<6x32x32xbf16, #tpu.memory_space<vmem>>, vector<1x32x32xbf16>
    %16 = vector.shape_cast %15 : vector<1x32x32xbf16> to vector<32x32xbf16>
    %cst_13 = arith.constant dense<0.000000e+00> : vector<10x32xf32>
    %17 = tpu.matmul %14, %16, %cst_13 {dimension_numbers = #tpu.dot_dimension_numbers<[1], [0], [0], [1], [0, 0, 1, 1], [], []>} : vector<10x32xbf16>, vector<32x32xbf16>, vector<10x32xf32> -> vector<10x32xf32>
    %18 = vector.extract_strided_slice %0 {offsets = [0, 0], sizes = [1, 32], strides = [1, 1]} : vector<13x32xf32> to vector<1x32xf32>
    %19 = vector.shape_cast %18 : vector<1x32xf32> to vector<32xf32>
    %20 = vector.shape_cast %19 : vector<32xf32> to vector<1x32xf32>
    %21 = vector.broadcast %20 : vector<1x32xf32> to vector<10x32xf32>
    %22 = arith.addf %17, %21 : vector<10x32xf32>
    %c1 = arith.constant 1 : index
    %c0_14 = arith.constant 0 : index
    %c0_15 = arith.constant 0 : index
    %23 = vector.load %arg5[%c1, %c0_14, %c0_15] : memref<6x32x32xbf16, #tpu.memory_space<vmem>>, vector<1x32x32xbf16>
    %24 = vector.shape_cast %23 : vector<1x32x32xbf16> to vector<32x32xbf16>
    %cst_16 = arith.constant dense<0.000000e+00> : vector<10x32xf32>
    %25 = tpu.matmul %14, %24, %cst_16 {dimension_numbers = #tpu.dot_dimension_numbers<[1], [0], [0], [1], [0, 0, 1, 1], [], []>} : vector<10x32xbf16>, vector<32x32xbf16>, vector<10x32xf32> -> vector<10x32xf32>
    %26 = vector.extract_strided_slice %0 {offsets = [1, 0], sizes = [1, 32], strides = [1, 1]} : vector<13x32xf32> to vector<1x32xf32>
    %27 = vector.shape_cast %26 : vector<1x32xf32> to vector<32xf32>
    %28 = vector.shape_cast %27 : vector<32xf32> to vector<1x32xf32>
    %29 = vector.broadcast %28 : vector<1x32xf32> to vector<10x32xf32>
    %30 = arith.addf %25, %29 : vector<10x32xf32>
    %c2 = arith.constant 2 : index
    %c0_17 = arith.constant 0 : index
    %c0_18 = arith.constant 0 : index
    %31 = vector.load %arg5[%c2, %c0_17, %c0_18] : memref<6x32x32xbf16, #tpu.memory_space<vmem>>, vector<1x32x32xbf16>
    %32 = vector.shape_cast %31 : vector<1x32x32xbf16> to vector<32x32xbf16>
    %cst_19 = arith.constant dense<0.000000e+00> : vector<10x32xf32>
    %33 = tpu.matmul %14, %32, %cst_19 {dimension_numbers = #tpu.dot_dimension_numbers<[1], [0], [0], [1], [0, 0, 1, 1], [], []>} : vector<10x32xbf16>, vector<32x32xbf16>, vector<10x32xf32> -> vector<10x32xf32>
    %34 = vector.extract_strided_slice %0 {offsets = [2, 0], sizes = [1, 32], strides = [1, 1]} : vector<13x32xf32> to vector<1x32xf32>
    %35 = vector.shape_cast %34 : vector<1x32xf32> to vector<32xf32>
    %36 = vector.shape_cast %35 : vector<32xf32> to vector<1x32xf32>
    %37 = vector.broadcast %36 : vector<1x32xf32> to vector<10x32xf32>
    %38 = arith.addf %33, %37 : vector<10x32xf32>
    %c0_20 = arith.constant 0 : index
    %c0_21 = arith.constant 0 : index
    %39 = vector.load %arg4[%c0_20, %c0_21] : memref<10x10xf32, #tpu.memory_space<vmem>>, vector<10x10xf32>
    %c3 = arith.constant 3 : index
    %c0_22 = arith.constant 0 : index
    %c0_23 = arith.constant 0 : index
    %40 = vector.load %arg5[%c3, %c0_22, %c0_23] : memref<6x32x32xbf16, #tpu.memory_space<vmem>>, vector<1x32x32xbf16>
    %41 = vector.shape_cast %40 : vector<1x32x32xbf16> to vector<32x32xbf16>
    %cst_24 = arith.constant 0.000000e+00 : f32
    %42 = vector.broadcast %cst_24 : f32 to vector<10x32xf32>
    %43 = vector.extract_strided_slice %0 {offsets = [3, 0], sizes = [1, 32], strides = [1, 1]} : vector<13x32xf32> to vector<1x32xf32>
    %44 = vector.shape_cast %43 : vector<1x32xf32> to vector<32xf32>
    %45 = vector.shape_cast %44 : vector<32xf32> to vector<1x32xf32>
    %46 = vector.broadcast %45 : vector<1x32xf32> to vector<10x32xf32>
    %47 = arith.addf %42, %46 : vector<10x32xf32>
    %48 = vector.extract_strided_slice %22 {offsets = [0, 0], sizes = [10, 8], strides = [1, 1]} : vector<10x32xf32> to vector<10x8xf32>
    %49 = arith.truncf %48 : vector<10x8xf32> to vector<10x8xbf16>
    %50 = vector.extract_strided_slice %30 {offsets = [0, 0], sizes = [10, 8], strides = [1, 1]} : vector<10x32xf32> to vector<10x8xf32>
    %51 = arith.truncf %50 : vector<10x8xf32> to vector<10x8xbf16>
    %52 = vector.extract_strided_slice %38 {offsets = [0, 0], sizes = [10, 8], strides = [1, 1]} : vector<10x32xf32> to vector<10x8xf32>
    %53 = arith.truncf %52 : vector<10x8xf32> to vector<10x8xbf16>
    %cst_25 = arith.constant dense<0.000000e+00> : vector<10x10xf32>
    %54 = tpu.matmul %49, %51, %cst_25 {dimension_numbers = #tpu.dot_dimension_numbers<[1], [1], [0], [0], [0, 0, 1, 0], [], []>} : vector<10x8xbf16>, vector<10x8xbf16>, vector<10x10xf32> -> vector<10x10xf32>
    %55 = arith.addf %54, %39 : vector<10x10xf32>
    %cst_26 = arith.constant dense<0xFF800000> : vector<10xf32>
    %56 = vector.multi_reduction <maximumf>, %55, %cst_26 [1] : vector<10x10xf32> to vector<10xf32>
    %57 = vector.shape_cast %56 : vector<10xf32> to vector<10x1xf32>
    %58 = vector.broadcast %57 : vector<10x1xf32> to vector<10x10xf32>
    %59 = arith.subf %55, %58 : vector<10x10xf32>
    %60 = math.exp %59 : vector<10x10xf32>
    %cst_27 = arith.constant dense<0.000000e+00> : vector<10xf32>
    %61 = vector.multi_reduction <add>, %60, %cst_27 [1] : vector<10x10xf32> to vector<10xf32>
    %62 = vector.shape_cast %61 : vector<10xf32> to vector<10x1xf32>
    %63 = tpu.reciprocal %62 {approx = true} : vector<10x1xf32> -> vector<10x1xf32>
    %64 = vector.broadcast %63 : vector<10x1xf32> to vector<10x10xf32>
    %65 = arith.mulf %60, %64 : vector<10x10xf32>
    %66 = arith.truncf %65 : vector<10x10xf32> to vector<10x10xbf16>
    %cst_28 = arith.constant dense<0.000000e+00> : vector<10x8xf32>
    %67 = tpu.matmul %66, %53, %cst_28 {dimension_numbers = #tpu.dot_dimension_numbers<[1], [0], [0], [1], [0, 0, 1, 1], [], []>} : vector<10x10xbf16>, vector<10x8xbf16>, vector<10x8xf32> -> vector<10x8xf32>
    %68 = arith.truncf %67 : vector<10x8xf32> to vector<10x8xbf16>
    %69 = vector.extract_strided_slice %41 {offsets = [0, 0], sizes = [8, 32], strides = [1, 1]} : vector<32x32xbf16> to vector<8x32xbf16>
    %cst_29 = arith.constant dense<0.000000e+00> : vector<10x32xf32>
    %70 = tpu.matmul %68, %69, %cst_29 {dimension_numbers = #tpu.dot_dimension_numbers<[1], [0], [0], [1], [0, 0, 1, 1], [], []>} : vector<10x8xbf16>, vector<8x32xbf16>, vector<10x32xf32> -> vector<10x32xf32>
    %71 = arith.addf %47, %70 : vector<10x32xf32>
    %72 = vector.extract_strided_slice %22 {offsets = [0, 8], sizes = [10, 8], strides = [1, 1]} : vector<10x32xf32> to vector<10x8xf32>
    %73 = arith.truncf %72 : vector<10x8xf32> to vector<10x8xbf16>
    %74 = vector.extract_strided_slice %30 {offsets = [0, 8], sizes = [10, 8], strides = [1, 1]} : vector<10x32xf32> to vector<10x8xf32>
    %75 = arith.truncf %74 : vector<10x8xf32> to vector<10x8xbf16>
    %76 = vector.extract_strided_slice %38 {offsets = [0, 8], sizes = [10, 8], strides = [1, 1]} : vector<10x32xf32> to vector<10x8xf32>
    %77 = arith.truncf %76 : vector<10x8xf32> to vector<10x8xbf16>
    %cst_30 = arith.constant dense<0.000000e+00> : vector<10x10xf32>
    %78 = tpu.matmul %73, %75, %cst_30 {dimension_numbers = #tpu.dot_dimension_numbers<[1], [1], [0], [0], [0, 0, 1, 0], [], []>} : vector<10x8xbf16>, vector<10x8xbf16>, vector<10x10xf32> -> vector<10x10xf32>
    %79 = arith.addf %78, %39 : vector<10x10xf32>
    %cst_31 = arith.constant dense<0xFF800000> : vector<10xf32>
    %80 = vector.multi_reduction <maximumf>, %79, %cst_31 [1] : vector<10x10xf32> to vector<10xf32>
    %81 = vector.shape_cast %80 : vector<10xf32> to vector<10x1xf32>
    %82 = vector.broadcast %81 : vector<10x1xf32> to vector<10x10xf32>
    %83 = arith.subf %79, %82 : vector<10x10xf32>
    %84 = math.exp %83 : vector<10x10xf32>
    %cst_32 = arith.constant dense<0.000000e+00> : vector<10xf32>
    %85 = vector.multi_reduction <add>, %84, %cst_32 [1] : vector<10x10xf32> to vector<10xf32>
    %86 = vector.shape_cast %85 : vector<10xf32> to vector<10x1xf32>
    %87 = tpu.reciprocal %86 {approx = true} : vector<10x1xf32> -> vector<10x1xf32>
    %88 = vector.broadcast %87 : vector<10x1xf32> to vector<10x10xf32>
    %89 = arith.mulf %84, %88 : vector<10x10xf32>
    %90 = arith.truncf %89 : vector<10x10xf32> to vector<10x10xbf16>
    %cst_33 = arith.constant dense<0.000000e+00> : vector<10x8xf32>
    %91 = tpu.matmul %90, %77, %cst_33 {dimension_numbers = #tpu.dot_dimension_numbers<[1], [0], [0], [1], [0, 0, 1, 1], [], []>} : vector<10x10xbf16>, vector<10x8xbf16>, vector<10x8xf32> -> vector<10x8xf32>
    %92 = arith.truncf %91 : vector<10x8xf32> to vector<10x8xbf16>
    %93 = vector.extract_strided_slice %41 {offsets = [8, 0], sizes = [8, 32], strides = [1, 1]} : vector<32x32xbf16> to vector<8x32xbf16>
    %cst_34 = arith.constant dense<0.000000e+00> : vector<10x32xf32>
    %94 = tpu.matmul %92, %93, %cst_34 {dimension_numbers = #tpu.dot_dimension_numbers<[1], [0], [0], [1], [0, 0, 1, 1], [], []>} : vector<10x8xbf16>, vector<8x32xbf16>, vector<10x32xf32> -> vector<10x32xf32>
    %95 = arith.addf %71, %94 : vector<10x32xf32>
    %96 = vector.extract_strided_slice %22 {offsets = [0, 16], sizes = [10, 8], strides = [1, 1]} : vector<10x32xf32> to vector<10x8xf32>
    %97 = arith.truncf %96 : vector<10x8xf32> to vector<10x8xbf16>
    %98 = vector.extract_strided_slice %30 {offsets = [0, 16], sizes = [10, 8], strides = [1, 1]} : vector<10x32xf32> to vector<10x8xf32>
    %99 = arith.truncf %98 : vector<10x8xf32> to vector<10x8xbf16>
    %100 = vector.extract_strided_slice %38 {offsets = [0, 16], sizes = [10, 8], strides = [1, 1]} : vector<10x32xf32> to vector<10x8xf32>
    %101 = arith.truncf %100 : vector<10x8xf32> to vector<10x8xbf16>
    %cst_35 = arith.constant dense<0.000000e+00> : vector<10x10xf32>
    %102 = tpu.matmul %97, %99, %cst_35 {dimension_numbers = #tpu.dot_dimension_numbers<[1], [1], [0], [0], [0, 0, 1, 0], [], []>} : vector<10x8xbf16>, vector<10x8xbf16>, vector<10x10xf32> -> vector<10x10xf32>
    %103 = arith.addf %102, %39 : vector<10x10xf32>
    %cst_36 = arith.constant dense<0xFF800000> : vector<10xf32>
    %104 = vector.multi_reduction <maximumf>, %103, %cst_36 [1] : vector<10x10xf32> to vector<10xf32>
    %105 = vector.shape_cast %104 : vector<10xf32> to vector<10x1xf32>
    %106 = vector.broadcast %105 : vector<10x1xf32> to vector<10x10xf32>
    %107 = arith.subf %103, %106 : vector<10x10xf32>
    %108 = math.exp %107 : vector<10x10xf32>
    %cst_37 = arith.constant dense<0.000000e+00> : vector<10xf32>
    %109 = vector.multi_reduction <add>, %108, %cst_37 [1] : vector<10x10xf32> to vector<10xf32>
    %110 = vector.shape_cast %109 : vector<10xf32> to vector<10x1xf32>
    %111 = tpu.reciprocal %110 {approx = true} : vector<10x1xf32> -> vector<10x1xf32>
    %112 = vector.broadcast %111 : vector<10x1xf32> to vector<10x10xf32>
    %113 = arith.mulf %108, %112 : vector<10x10xf32>
    %114 = arith.truncf %113 : vector<10x10xf32> to vector<10x10xbf16>
    %cst_38 = arith.constant dense<0.000000e+00> : vector<10x8xf32>
    %115 = tpu.matmul %114, %101, %cst_38 {dimension_numbers = #tpu.dot_dimension_numbers<[1], [0], [0], [1], [0, 0, 1, 1], [], []>} : vector<10x10xbf16>, vector<10x8xbf16>, vector<10x8xf32> -> vector<10x8xf32>
    %116 = arith.truncf %115 : vector<10x8xf32> to vector<10x8xbf16>
    %117 = vector.extract_strided_slice %41 {offsets = [16, 0], sizes = [8, 32], strides = [1, 1]} : vector<32x32xbf16> to vector<8x32xbf16>
    %cst_39 = arith.constant dense<0.000000e+00> : vector<10x32xf32>
    %118 = tpu.matmul %116, %117, %cst_39 {dimension_numbers = #tpu.dot_dimension_numbers<[1], [0], [0], [1], [0, 0, 1, 1], [], []>} : vector<10x8xbf16>, vector<8x32xbf16>, vector<10x32xf32> -> vector<10x32xf32>
    %119 = arith.addf %95, %118 : vector<10x32xf32>
    %120 = vector.extract_strided_slice %22 {offsets = [0, 24], sizes = [10, 8], strides = [1, 1]} : vector<10x32xf32> to vector<10x8xf32>
    %121 = arith.truncf %120 : vector<10x8xf32> to vector<10x8xbf16>
    %122 = vector.extract_strided_slice %30 {offsets = [0, 24], sizes = [10, 8], strides = [1, 1]} : vector<10x32xf32> to vector<10x8xf32>
    %123 = arith.truncf %122 : vector<10x8xf32> to vector<10x8xbf16>
    %124 = vector.extract_strided_slice %38 {offsets = [0, 24], sizes = [10, 8], strides = [1, 1]} : vector<10x32xf32> to vector<10x8xf32>
    %125 = arith.truncf %124 : vector<10x8xf32> to vector<10x8xbf16>
    %cst_40 = arith.constant dense<0.000000e+00> : vector<10x10xf32>
    %126 = tpu.matmul %121, %123, %cst_40 {dimension_numbers = #tpu.dot_dimension_numbers<[1], [1], [0], [0], [0, 0, 1, 0], [], []>} : vector<10x8xbf16>, vector<10x8xbf16>, vector<10x10xf32> -> vector<10x10xf32>
    %127 = arith.addf %126, %39 : vector<10x10xf32>
    %cst_41 = arith.constant dense<0xFF800000> : vector<10xf32>
    %128 = vector.multi_reduction <maximumf>, %127, %cst_41 [1] : vector<10x10xf32> to vector<10xf32>
    %129 = vector.shape_cast %128 : vector<10xf32> to vector<10x1xf32>
    %130 = vector.broadcast %129 : vector<10x1xf32> to vector<10x10xf32>
    %131 = arith.subf %127, %130 : vector<10x10xf32>
    %132 = math.exp %131 : vector<10x10xf32>
    %cst_42 = arith.constant dense<0.000000e+00> : vector<10xf32>
    %133 = vector.multi_reduction <add>, %132, %cst_42 [1] : vector<10x10xf32> to vector<10xf32>
    %134 = vector.shape_cast %133 : vector<10xf32> to vector<10x1xf32>
    %135 = tpu.reciprocal %134 {approx = true} : vector<10x1xf32> -> vector<10x1xf32>
    %136 = vector.broadcast %135 : vector<10x1xf32> to vector<10x10xf32>
    %137 = arith.mulf %132, %136 : vector<10x10xf32>
    %138 = arith.truncf %137 : vector<10x10xf32> to vector<10x10xbf16>
    %cst_43 = arith.constant dense<0.000000e+00> : vector<10x8xf32>
    %139 = tpu.matmul %138, %125, %cst_43 {dimension_numbers = #tpu.dot_dimension_numbers<[1], [0], [0], [1], [0, 0, 1, 1], [], []>} : vector<10x10xbf16>, vector<10x8xbf16>, vector<10x8xf32> -> vector<10x8xf32>
    %140 = arith.truncf %139 : vector<10x8xf32> to vector<10x8xbf16>
    %141 = vector.extract_strided_slice %41 {offsets = [24, 0], sizes = [8, 32], strides = [1, 1]} : vector<32x32xbf16> to vector<8x32xbf16>
    %cst_44 = arith.constant dense<0.000000e+00> : vector<10x32xf32>
    %142 = tpu.matmul %140, %141, %cst_44 {dimension_numbers = #tpu.dot_dimension_numbers<[1], [0], [0], [1], [0, 0, 1, 1], [], []>} : vector<10x8xbf16>, vector<8x32xbf16>, vector<10x32xf32> -> vector<10x32xf32>
    %143 = arith.addf %119, %142 : vector<10x32xf32>
    %144 = arith.addf %13, %143 : vector<10x32xf32>
    %145 = vector.extract_strided_slice %0 {offsets = [7, 0], sizes = [1, 32], strides = [1, 1]} : vector<13x32xf32> to vector<1x32xf32>
    %146 = vector.shape_cast %145 : vector<1x32xf32> to vector<32xf32>
    %147 = vector.extract_strided_slice %0 {offsets = [8, 0], sizes = [1, 32], strides = [1, 1]} : vector<13x32xf32> to vector<1x32xf32>
    %148 = vector.shape_cast %147 : vector<1x32xf32> to vector<32xf32>
    %cst_45 = arith.constant dense<0.000000e+00> : vector<10xf32>
    %149 = vector.multi_reduction <add>, %144, %cst_45 [1] : vector<10x32xf32> to vector<10xf32>
    %150 = vector.shape_cast %149 : vector<10xf32> to vector<10x1xf32>
    %cst_46 = arith.constant 3.200000e+01 : f32
    %151 = vector.broadcast %cst_46 : f32 to vector<10x1xf32>
    %152 = arith.divf %150, %151 : vector<10x1xf32>
    %153 = vector.broadcast %152 : vector<10x1xf32> to vector<10x32xf32>
    %154 = arith.subf %144, %153 : vector<10x32xf32>
    %155 = arith.mulf %154, %154 : vector<10x32xf32>
    %cst_47 = arith.constant dense<0.000000e+00> : vector<10xf32>
    %156 = vector.multi_reduction <add>, %155, %cst_47 [1] : vector<10x32xf32> to vector<10xf32>
    %157 = vector.shape_cast %156 : vector<10xf32> to vector<10x1xf32>
    %cst_48 = arith.constant 3.200000e+01 : f32
    %158 = vector.broadcast %cst_48 : f32 to vector<10x1xf32>
    %159 = arith.divf %157, %158 : vector<10x1xf32>
    %cst_49 = arith.constant 9.99999974E-6 : f32
    %160 = vector.broadcast %cst_49 : f32 to vector<10x1xf32>
    %161 = arith.addf %159, %160 : vector<10x1xf32>
    %162 = math.rsqrt %161 : vector<10x1xf32>
    %163 = vector.broadcast %162 : vector<10x1xf32> to vector<10x32xf32>
    %164 = arith.mulf %154, %163 : vector<10x32xf32>
    %165 = vector.shape_cast %146 : vector<32xf32> to vector<1x32xf32>
    %166 = vector.broadcast %165 : vector<1x32xf32> to vector<10x32xf32>
    %167 = arith.mulf %164, %166 : vector<10x32xf32>
    %168 = vector.shape_cast %148 : vector<32xf32> to vector<1x32xf32>
    %169 = vector.broadcast %168 : vector<1x32xf32> to vector<10x32xf32>
    %170 = arith.addf %167, %169 : vector<10x32xf32>
    %171 = arith.truncf %170 : vector<10x32xf32> to vector<10x32xbf16>
    %c4 = arith.constant 4 : index
    %c0_50 = arith.constant 0 : index
    %c0_51 = arith.constant 0 : index
    %172 = vector.load %arg5[%c4, %c0_50, %c0_51] : memref<6x32x32xbf16, #tpu.memory_space<vmem>>, vector<1x32x32xbf16>
    %173 = vector.shape_cast %172 : vector<1x32x32xbf16> to vector<32x32xbf16>
    %cst_52 = arith.constant dense<0.000000e+00> : vector<10x32xf32>
    %174 = tpu.matmul %171, %173, %cst_52 {dimension_numbers = #tpu.dot_dimension_numbers<[1], [0], [0], [1], [0, 0, 1, 1], [], []>} : vector<10x32xbf16>, vector<32x32xbf16>, vector<10x32xf32> -> vector<10x32xf32>
    %175 = vector.extract_strided_slice %0 {offsets = [4, 0], sizes = [1, 32], strides = [1, 1]} : vector<13x32xf32> to vector<1x32xf32>
    %176 = vector.shape_cast %175 : vector<1x32xf32> to vector<32xf32>
    %177 = vector.shape_cast %176 : vector<32xf32> to vector<1x32xf32>
    %178 = vector.broadcast %177 : vector<1x32xf32> to vector<10x32xf32>
    %179 = arith.addf %174, %178 : vector<10x32xf32>
    %cst_53 = arith.constant 0.000000e+00 : f32
    %180 = vector.broadcast %cst_53 : f32 to vector<10x32xf32>
    %181 = arith.maximumf %179, %180 : vector<10x32xf32>
    %182 = arith.truncf %181 : vector<10x32xf32> to vector<10x32xbf16>
    %c5 = arith.constant 5 : index
    %c0_54 = arith.constant 0 : index
    %c0_55 = arith.constant 0 : index
    %183 = vector.load %arg5[%c5, %c0_54, %c0_55] : memref<6x32x32xbf16, #tpu.memory_space<vmem>>, vector<1x32x32xbf16>
    %184 = vector.shape_cast %183 : vector<1x32x32xbf16> to vector<32x32xbf16>
    %cst_56 = arith.constant dense<0.000000e+00> : vector<10x32xf32>
    %185 = tpu.matmul %182, %184, %cst_56 {dimension_numbers = #tpu.dot_dimension_numbers<[1], [0], [0], [1], [0, 0, 1, 1], [], []>} : vector<10x32xbf16>, vector<32x32xbf16>, vector<10x32xf32> -> vector<10x32xf32>
    %186 = vector.extract_strided_slice %0 {offsets = [5, 0], sizes = [1, 32], strides = [1, 1]} : vector<13x32xf32> to vector<1x32xf32>
    %187 = vector.shape_cast %186 : vector<1x32xf32> to vector<32xf32>
    %188 = vector.shape_cast %187 : vector<32xf32> to vector<1x32xf32>
    %189 = vector.broadcast %188 : vector<1x32xf32> to vector<10x32xf32>
    %190 = arith.addf %185, %189 : vector<10x32xf32>
    %191 = arith.addf %170, %190 : vector<10x32xf32>
    %192 = vector.extract_strided_slice %0 {offsets = [9, 0], sizes = [1, 32], strides = [1, 1]} : vector<13x32xf32> to vector<1x32xf32>
    %193 = vector.shape_cast %192 : vector<1x32xf32> to vector<32xf32>
    %194 = vector.extract_strided_slice %0 {offsets = [10, 0], sizes = [1, 32], strides = [1, 1]} : vector<13x32xf32> to vector<1x32xf32>
    %195 = vector.shape_cast %194 : vector<1x32xf32> to vector<32xf32>
    %cst_57 = arith.constant dense<0.000000e+00> : vector<10xf32>
    %196 = vector.multi_reduction <add>, %191, %cst_57 [1] : vector<10x32xf32> to vector<10xf32>
    %197 = vector.shape_cast %196 : vector<10xf32> to vector<10x1xf32>
    %cst_58 = arith.constant 3.200000e+01 : f32
    %198 = vector.broadcast %cst_58 : f32 to vector<10x1xf32>
    %199 = arith.divf %197, %198 : vector<10x1xf32>
    %200 = vector.broadcast %199 : vector<10x1xf32> to vector<10x32xf32>
    %201 = arith.subf %191, %200 : vector<10x32xf32>
    %202 = arith.mulf %201, %201 : vector<10x32xf32>
    %cst_59 = arith.constant dense<0.000000e+00> : vector<10xf32>
    %203 = vector.multi_reduction <add>, %202, %cst_59 [1] : vector<10x32xf32> to vector<10xf32>
    %204 = vector.shape_cast %203 : vector<10xf32> to vector<10x1xf32>
    %cst_60 = arith.constant 3.200000e+01 : f32
    %205 = vector.broadcast %cst_60 : f32 to vector<10x1xf32>
    %206 = arith.divf %204, %205 : vector<10x1xf32>
    %cst_61 = arith.constant 9.99999974E-6 : f32
    %207 = vector.broadcast %cst_61 : f32 to vector<10x1xf32>
    %208 = arith.addf %206, %207 : vector<10x1xf32>
    %209 = math.rsqrt %208 : vector<10x1xf32>
    %210 = vector.broadcast %209 : vector<10x1xf32> to vector<10x32xf32>
    %211 = arith.mulf %201, %210 : vector<10x32xf32>
    %212 = vector.shape_cast %193 : vector<32xf32> to vector<1x32xf32>
    %213 = vector.broadcast %212 : vector<1x32xf32> to vector<10x32xf32>
    %214 = arith.mulf %211, %213 : vector<10x32xf32>
    %215 = vector.shape_cast %195 : vector<32xf32> to vector<1x32xf32>
    %216 = vector.broadcast %215 : vector<1x32xf32> to vector<10x32xf32>
    %217 = arith.addf %214, %216 : vector<10x32xf32>
    %218 = arith.truncf %217 : vector<10x32xf32> to vector<10x32xbf16>
    %c0_62 = arith.constant 0 : index
    %c0_63 = arith.constant 0 : index
    %219 = vector.load %arg6[%c0_62, %c0_63] : memref<32x128xbf16, #tpu.memory_space<vmem>>, vector<32x128xbf16>
    %cst_64 = arith.constant dense<0.000000e+00> : vector<10x128xf32>
    %220 = tpu.matmul %218, %219, %cst_64 {dimension_numbers = #tpu.dot_dimension_numbers<[1], [0], [0], [1], [0, 0, 1, 1], [], []>} : vector<10x32xbf16>, vector<32x128xbf16>, vector<10x128xf32> -> vector<10x128xf32>
    %c0_65 = arith.constant 0 : index
    %c0_66 = arith.constant 0 : index
    %221 = vector.load %arg9[%c0_65, %c0_66] : memref<1x128xf32, #tpu.memory_space<vmem>>, vector<1x128xf32>
    %222 = vector.broadcast %221 : vector<1x128xf32> to vector<10x128xf32>
    %223 = arith.addf %220, %222 : vector<10x128xf32>
    %cst_67 = arith.constant 0.000000e+00 : f32
    %224 = vector.broadcast %cst_67 : f32 to vector<10x128xf32>
    %225 = arith.maximumf %223, %224 : vector<10x128xf32>
    %226 = arith.truncf %225 : vector<10x128xf32> to vector<10x128xbf16>
    %c0_68 = arith.constant 0 : index
    %c0_69 = arith.constant 0 : index
    %227 = vector.load %arg7[%c0_68, %c0_69] : memref<128x32xbf16, #tpu.memory_space<vmem>>, vector<128x32xbf16>
    %cst_70 = arith.constant dense<0.000000e+00> : vector<10x32xf32>
    %228 = tpu.matmul %226, %227, %cst_70 {dimension_numbers = #tpu.dot_dimension_numbers<[1], [0], [0], [1], [0, 0, 1, 1], [], []>} : vector<10x128xbf16>, vector<128x32xbf16>, vector<10x32xf32> -> vector<10x32xf32>
    %229 = vector.extract_strided_slice %0 {offsets = [6, 0], sizes = [1, 32], strides = [1, 1]} : vector<13x32xf32> to vector<1x32xf32>
    %230 = vector.shape_cast %229 : vector<1x32xf32> to vector<32xf32>
    %231 = vector.shape_cast %230 : vector<32xf32> to vector<1x32xf32>
    %232 = vector.broadcast %231 : vector<1x32xf32> to vector<10x32xf32>
    %233 = arith.addf %228, %232 : vector<10x32xf32>
    %234 = arith.addf %233, %217 : vector<10x32xf32>
    %235 = vector.extract_strided_slice %0 {offsets = [11, 0], sizes = [1, 32], strides = [1, 1]} : vector<13x32xf32> to vector<1x32xf32>
    %236 = vector.shape_cast %235 : vector<1x32xf32> to vector<32xf32>
    %237 = vector.extract_strided_slice %0 {offsets = [12, 0], sizes = [1, 32], strides = [1, 1]} : vector<13x32xf32> to vector<1x32xf32>
    %238 = vector.shape_cast %237 : vector<1x32xf32> to vector<32xf32>
    %cst_71 = arith.constant dense<0.000000e+00> : vector<10xf32>
    %239 = vector.multi_reduction <add>, %234, %cst_71 [1] : vector<10x32xf32> to vector<10xf32>
    %240 = vector.shape_cast %239 : vector<10xf32> to vector<10x1xf32>
    %cst_72 = arith.constant 3.200000e+01 : f32
    %241 = vector.broadcast %cst_72 : f32 to vector<10x1xf32>
    %242 = arith.divf %240, %241 : vector<10x1xf32>
    %243 = vector.broadcast %242 : vector<10x1xf32> to vector<10x32xf32>
    %244 = arith.subf %234, %243 : vector<10x32xf32>
    %245 = arith.mulf %244, %244 : vector<10x32xf32>
    %cst_73 = arith.constant dense<0.000000e+00> : vector<10xf32>
    %246 = vector.multi_reduction <add>, %245, %cst_73 [1] : vector<10x32xf32> to vector<10xf32>
    %247 = vector.shape_cast %246 : vector<10xf32> to vector<10x1xf32>
    %cst_74 = arith.constant 3.200000e+01 : f32
    %248 = vector.broadcast %cst_74 : f32 to vector<10x1xf32>
    %249 = arith.divf %247, %248 : vector<10x1xf32>
    %cst_75 = arith.constant 9.99999974E-6 : f32
    %250 = vector.broadcast %cst_75 : f32 to vector<10x1xf32>
    %251 = arith.addf %249, %250 : vector<10x1xf32>
    %252 = math.rsqrt %251 : vector<10x1xf32>
    %253 = vector.broadcast %252 : vector<10x1xf32> to vector<10x32xf32>
    %254 = arith.mulf %244, %253 : vector<10x32xf32>
    %255 = vector.shape_cast %236 : vector<32xf32> to vector<1x32xf32>
    %256 = vector.broadcast %255 : vector<1x32xf32> to vector<10x32xf32>
    %257 = arith.mulf %254, %256 : vector<10x32xf32>
    %258 = vector.shape_cast %238 : vector<32xf32> to vector<1x32xf32>
    %259 = vector.broadcast %258 : vector<1x32xf32> to vector<10x32xf32>
    %260 = arith.addf %257, %259 : vector<10x32xf32>
    %c0_76 = arith.constant 0 : index
    %c0_77 = arith.constant 0 : index
    %c0_78 = arith.constant 0 : index
    %261 = vector.load %arg10[%c0_76, %c0_77, %c0_78] : memref<1x10x32xf32, #tpu.memory_space<vmem>>, vector<1x10x32xf32>
    %262 = vector.shape_cast %261 : vector<1x10x32xf32> to vector<10x32xf32>
    %263 = vector.shape_cast %260 : vector<10x32xf32> to vector<1x10x32xf32>
    tpu.vector_store %arg10[%c0_76, %c0_77, %c0_78], %263 {strides = array<i32>} : memref<1x10x32xf32, #tpu.memory_space<vmem>>, vector<1x10x32xf32>,
    return
  }
  func.func @transform_0(%arg0: i32) -> (i32, i32, i32) {
    %c0_i32 = arith.constant 0 : i32
    %c0_i32_0 = arith.constant 0 : i32
    %c0_i32_1 = arith.constant 0 : i32
    return %arg0, %c0_i32, %c0_i32_0 : i32, i32, i32
  }
  func.func @transform_1(%arg0: i32) -> (i32, i32) {
    %c0_i32 = arith.constant 0 : i32
    %c0_i32_0 = arith.constant 0 : i32
    %c0_i32_1 = arith.constant 0 : i32
    return %c0_i32, %c0_i32_0 : i32, i32
  }
  func.func @transform_2(%arg0: i32) -> (i32, i32) {
    %c0_i32 = arith.constant 0 : i32
    %c0_i32_0 = arith.constant 0 : i32
    %c0_i32_1 = arith.constant 0 : i32
    return %c0_i32, %c0_i32_0 : i32, i32
  }
  func.func @transform_3(%arg0: i32) -> (i32, i32) {
    %c0_i32 = arith.constant 0 : i32
    %c0_i32_0 = arith.constant 0 : i32
    %c0_i32_1 = arith.constant 0 : i32
    return %c0_i32, %c0_i32_0 : i32, i32
  }
  func.func @transform_4(%arg0: i32) -> (i32, i32, i32) {
    %c0_i32 = arith.constant 0 : i32
    %c0_i32_0 = arith.constant 0 : i32
    %c0_i32_1 = arith.constant 0 : i32
    %c0_i32_2 = arith.constant 0 : i32
    return %c0_i32, %c0_i32_0, %c0_i32_1 : i32, i32, i32
  }
  func.func @transform_5(%arg0: i32) -> (i32, i32) {
    %c0_i32 = arith.constant 0 : i32
    %c0_i32_0 = arith.constant 0 : i32
    %c0_i32_1 = arith.constant 0 : i32
    return %c0_i32, %c0_i32_0 : i32, i32
  }
  func.func @transform_6(%arg0: i32) -> (i32, i32) {
    %c0_i32 = arith.constant 0 : i32
    %c0_i32_0 = arith.constant 0 : i32
    %c0_i32_1 = arith.constant 0 : i32
    return %c0_i32, %c0_i32_0 : i32, i32
  }
  func.func @transform_7(%arg0: i32) -> (i32, i32) {
    %c0_i32 = arith.constant 0 : i32
    %c0_i32_0 = arith.constant 0 : i32
    %c0_i32_1 = arith.constant 0 : i32
    return %c0_i32, %c0_i32_0 : i32, i32
  }
  func.func @transform_8(%arg0: i32) -> (i32, i32) {
    %c0_i32 = arith.constant 0 : i32
    %c0_i32_0 = arith.constant 0 : i32
    %c0_i32_1 = arith.constant 0 : i32
    return %c0_i32, %c0_i32_0 : i32, i32
  }
  func.func @transform_9(%arg0: i32) -> (i32, i32, i32) {
    %c0_i32 = arith.constant 0 : i32
    %c0_i32_0 = arith.constant 0 : i32
    %c0_i32_1 = arith.constant 0 : i32
    return %arg0, %c0_i32, %c0_i32_0 : i32, i32, i32
  }
}

</mosaic_0001>

<bundles_post_ra>
// kernel: tpu_custom_call.1
= control target key start
LH: loop header
LB: loop body
LE: loop exit
PB: predicated region body
PF: predicated region fallthrough
CT: control target
= control target key end

     0   :  { %14 = vsyncpa [#allocation3], 0  ;;  %s2329_s30 = smov 0   ;;  %s2718_s0 = inlined_call_operand.vmem [shape: s32[2,10,1], index: 0, kind: input, shape index: {}]   ;;  %s2719_s1 = inlined_call_operand.vmem [shape: bf16[64,32], index: 1, kind: input, shape index: {}]   ;;  %s2720_s2 = inlined_call_operand.vmem [shape: f32[10,32], index: 2, kind: input, shape index: {}]   ;;  %s2721_s3 = inlined_call_operand.vmem [shape: f32[10,10], index: 3, kind: input, shape index: {}]   ;;  %s2722_s4 = inlined_call_operand.vmem [shape: bf16[6,32,32], index: 4, kind: input, shape index: {}]   ;;  %s2723_s5 = inlined_call_operand.vmem [shape: bf16[32,128], index: 5, kind: input, shape index: {}]   ;;  %s2724_s6 = inlined_call_operand.vmem [shape: bf16[128,32], index: 6, kind: input, shape index: {}]   ;;  %s2725_s7 = inlined_call_operand.hbm [shape: f32[13,32], index: 7, kind: input, shape index: {}]   ;;  %s2726_s8 = inlined_call_operand.vmem [shape: f32[1,128], index: 8, kind: input, shape index: {}]   ;;  %s2727_s9 = inlined_call_operand.vmem [shape: f32[2,10,32], index: 9, kind: output, shape index: {}]  }
   0x1 LB: > { %s2335_s10 = sadd.s32 4294967295, %s2268_s30   ;;  %p1851_p0 = scmp.ge.s32.totalorder %s2268_s30, 1  ;;  %s2268_s30 = sphi %s2329_s30, %s20_s30  }
   0x2   : > { %p245_p1 = scmp.lt.s32.totalorder %s2268_s30, 3  ;;  %s2270_s11 = smov [#allocation2]  }
   0x3   : > { %s275_s12 = sshll.u32 %s2270_s11, 4  ;;  %p2144_p3 = scmp.eq.s32.totalorder %s2335_s10, 0  ;;  %s276_s12 = int_to_ptr.vmem [resolvable:$true] %s275_s12 }
   0x4   : > { %p2339_p2 = pnand %p1851_p0, %p245_p1  ;;  %s2243_s14 = scalar_lea.vmem %s276_s12, 256 }
   0x5   : > { %p2244_p7 = scmp.ne.s32.totalorder %s276_s12, %s2243_s14  ;;  %p2251_p10 = scmp.lt.s32.totalorder %s276_s12, %s276_s12 }
   0x6   : > { %p2140_p4 = pneg %p2339_p2  ;;  %p2252_p11 = scmp.lt.s32.totalorder %s2243_s14, %s2243_s14 }
   0x8   : > { %p2141_p5 = pnand %p2144_p3, %p2140_p4  ;;  %p2253_p12 = por %p2252_p11, %p2251_p10 }
   0xa   : > { %p2234_p6 = pneg %p2141_p5 }
   0xc   : > { %p2246_p8 = pnand %p2244_p7, %p2234_p6 }
   0xe   : > { %p2247_p9 = pneg %p2246_p8 }
  0x10   : > { %p2254_p13 = pnand %p2253_p12, %p2247_p9 }
  0x12   : > { %2257 = shalt.err (!%p2254_p13)
}
  0x13   : > { %s2271_s15 = smov 128   ;;  %s2272_s16 = smov 8  }
  0x14   : > { %2143 = dma.hbm_to_vmem [thread:$0]  (!%p2141_p5), %s2725_s7, 256, %s276_s12, [#allocation3], %s2271_s15, %s2271_s15, %s2272_s16  }
  0x15   : > { %302 = sbr.rel (%p2339_p2) target bundleno = 4796 (0x12bc), region = 56 }
  0x1a   : > { %2263 = dma.done.wait (%p2144_p3), [#allocation3], 256  }
  0x1b   : > { %2265 = vsyncadd (%p2144_p3), [#allocation3], 4294967040  ;;  %p338_p0 = scmp.lt.s32.totalorder %s2335_s10, 1  ;;  %v2273_v0 = vmov 0   ;;  %v2274_v1 = vmov 0.0   ;;  %v2164_v3 = vld [vmem:[%s2719_s1 + $0x18] sm:$0xff]   ;;  %v353_v8 = vlaneseq }
  0x1c   : > { %2163 = vset.pattern.permute.xlu0 %v2273_v0  ;;  %1984 = vmatprep.subr.bf16.mxu1 %v2274_v1  ;;  %v2165_v5 = vld [vmem:[%s2719_s1 + $0x10] sm:$0xff]   ;;  %vm2275_vm0 = vmmov 0   ;;  %v2166_v6 = vld [vmem:[%s2719_s1 + $0x8] sm:$0xff]   ;;  %v2167_v7 = vld [vmem:[%s2719_s1] sm:$0xff]   ;;  %vm400_vm3 = vcmask 523264   ;;  %vm466_vm4 = vcmask 261120  }
  0x1d   : > { %s2730_s10 = smov (!%p338_p0, %s2335_s10), 1  ;;  %2012 = vmatprep.subr.bf16.mxu0 %v2274_v1  ;;  %1985 = vmatpush3.bf16.msra.mxu1 %v2164_v3  ;;  %v354_v9 = vand.u32 127, %v353_v8  ;;  %v2168_v15 = vld [vmem:[%s2722_s4 + $0x8] sm:$0xff]   ;;  %v2170_v17 = vld [vmem:[%s2722_s4] sm:$0xff]   ;;  %v2172_v27 = vld [vmem:[%s2722_s4 + $0x18] sm:$0xff]   ;;  %v2438_v30 = vshrl.u32 %v353_v8, 7 }
  0x1e   : > { %s1926_s19 = sshll.u32 %s2730_s10, 4  ;;  %1986 = vmatprep.subr.bf16.mxu1 %v2274_v1  ;;  %1992 = vmatprep.mubr.msk.bf16.mxu1 %vm2275_vm0, %v2274_v1  ;;  %v2169_v16 = vld [vmem:[%s2722_s4 + $0x28] sm:$0xff]   ;;  %v2171_v18 = vld [vmem:[%s2722_s4 + $0x20] sm:$0xff]   ;;  %v2173_v29 = vld [vmem:[%s2722_s4 + $0x10] sm:$0xff]   ;;  %vm726_vm5 = vcmask 1044480   ;;  %vm650_vm6 = vcmask 64512  }
  0x1f   : > { %s342_s22 = scalar_lea.vmem %s2718_s0, %s1926_s19  ;;  %2016 = vmatprep.mubr.msk.bf16.mxu0 %vm2275_vm0, %v2274_v1  ;;  %2013 = vmatpush3.bf16.msra.mxu0 %v2169_v16  ;;  %v374_v20 = vld [vmem:[%s2720_s2] sm:$0xff]  ;;  %v375_v22 = vld [vmem:[%s2720_s2 + $0x8] sm:$0x3]  ;;  %v580_v31 = vsub.s32 2, %v2438_v30  ;;  %v518_v42 = vsub.s32 1, %v2438_v30  ;;  %v452_v51 = vsub.s32 0, %v2438_v30 }
  0x20   : > { %v351_v2 = vld [vmem:[%s342_s22] sm:$0xff]  ;;  %v352_v4 = vld [vmem:[%s342_s22 + $0x8] sm:$0x3]  ;;  %2014 = vmatprep.subr.bf16.mxu0 %v2274_v1  ;;  %vm698_vm7 = vcmask 80896   ;;  %vm702_vm8 = vcmask 74752   ;;  %s2276_s14 = smov 120   ;;  %s347_s22 = scalar_lea.vmem %s2727_s9, %s1926_s19 }
  0x21   : > { %356 = vperm.xlu0 %2163, %v351_v2   ;;  %1987 = vmatpush3.bf16.msra.mxu1 %v2165_v5  ;;  %v2441_v32 = vld [vmem:[#allocation2] sm:$0xff]  ;;  %v2479_v2 = vld [vmem:[%s2721_s3 + $0x8] sm:$0x3]  ;;  %vm775_vm9 = vcmask 1043456   ;;  %s2277_s17 = smov 112   ;;  %s2278_s21 = smov 104  }
  0x22   : > { %1988 = vmatprep.subr.bf16.mxu1 %v2274_v1  ;;  %v581_v35 = vrot.slane %v2441_v32, %v580_v31  ;;  %v519_v47 = vrot.slane %v2441_v32, %v518_v42  ;;  %v453_v56 = vrot.slane %v2441_v32, %v452_v51  ;;  %v2473_v61 = vld [vmem:[%s2721_s3] sm:$0xff]  ;;  %vm1349_vm10 = vcmask 254976  }
  0x23   : > { %2015 = vmatpush3.bf16.msra.mxu0 %v2171_v18 }
  0x24   : > { %2026 = vmatprep.subr.bf16.mxu0 %v2274_v1 }
  0x25   : > { %359 = vperm.xlu0 %2163, %v352_v4   ;;  %1989 = vmatpush3.bf16.msra.mxu1 %v2166_v6 }
  0x26   : > { %1990 = vmatprep.subr.bf16.mxu1 %v2274_v1 }
  0x29   : > { %1991 = vmatpush3.bf16.msra.mxu1 %v2167_v7 }
  0x2a   : > { %1996 = vmatprep.subr.bf16.mxu1 %v2274_v1 }
  0x9c   : > { %v357_v10 = vpop.permute.xlu0 %356 }
  0x9d   : > { %vm361_vm1 = vcmp.eq.s32.totalorder %v357_v10, %v354_v9 }
  0x9e   : > { %v363_v12 = vsel %vm361_vm1, 1.0, %v2274_v1 }
  0xa0   : > { %v360_v11 = vpop.permute.xlu0 %359 }
  0xa1   : > { %vm362_vm2 = vcmp.eq.s32.totalorder %v360_v11, %v354_v9 }
  0xa2   : > { %v364_v13 = vsel %vm362_vm2, 1.0, %v2274_v1 }
  0xa3   : > { %v365_v14 = vpack.c.bf16 %v364_v13, %v363_v12 }
  0xa5   : > { %1993 = vmatmul.mubr.msk.bf16.vlgmr.msra.gmra.mxu1 %vm400_vm3, %v365_v14 }
  0xa6   : > { %2000 = vmatprep.mubr.msk.bf16.mxu1 %vm2275_vm0, %v2274_v1  ;;  %1997 = vmatpush3.bf16.msra.mxu1 %v2168_v15 }
  0xa7   : > { %1998 = vmatprep.subr.bf16.mxu1 %v2274_v1 }
  0xaa   : > { %1999 = vmatpush3.bf16.msra.mxu1 %v2170_v17 }
  0xab   : > { %2004 = vmatprep.subr.bf16.mxu1 %v2274_v1 }
 0x165   : > { %v438_v19 = vpop.f32.mrf.mxu1 }
 0x166   : > { %v2415_v24 = vadd.f32 %v438_v19, %v374_v20 }
 0x167   : > { %v1994_v21 = vpop.f32.mrf.mxu1 }
 0x169   : > { %v441_v23 = vpop.f32.mrf.mxu1 }
 0x16a   : > { %v2417_v25 = vadd.f32 %v441_v23, %v375_v22 }
 0x16b   : > { %v1995_v26 = vpop.f32.mrf.mxu1 }
 0x16c   : > { %v445_v28 = vpack.c.bf16 %v2417_v25, %v2415_v24 }
 0x16e   : > { %2001 = vmatmul.mubr.msk.bf16.vlgmr.msra.gmra.mxu1 %vm466_vm4, %v445_v28  ;;  %2017 = vmatmul.mubr.msk.bf16.vlgmr.msra.gmra.mxu0 %vm466_vm4, %v445_v28 }
 0x16f   : > { %2005 = vmatpush3.bf16.msra.mxu1 %v2172_v27  ;;  %2008 = vmatprep.mubr.msk.bf16.mxu1 %vm2275_vm0, %v2274_v1 }
 0x170   : > { %2006 = vmatprep.subr.bf16.mxu1 %v2274_v1  ;;  %2028 = vmatprep.mubr.msk.bf16.mxu0 %vm2275_vm0, %v2274_v1 }
 0x173   : > { %2007 = vmatpush3.bf16.msra.mxu1 %v2173_v29 }
 0x174   : > { %2020 = vmatprep.subr.bf16.mxu1 %v2274_v1 }
 0x176   : > { %2009 = vmatmul.mubr.msk.bf16.vlgmr.msra.gmra.mxu1 %vm466_vm4, %v445_v28 }
 0x177   : > { %2022 = vmatprep.mubr.msk.bf16.mxu1 %vm2275_vm0, %v2274_v1 }
 0x22e   : > { %v504_v33 = vpop.f32.mrf.mxu1  ;;  %v628_v34 = vpop.f32.mrf.mxu0 }
 0x22f   : > { %v629_v40 = vadd.f32 %v628_v34, %v581_v35  ;;  %v505_v59 = vadd.f32 %v504_v33, %v453_v56  ;;  %v1882_v33 = vld [vmem:[%s2722_s4 + $0x30] sm:$0xf] }
 0x230   : > { %v2002_v36 = vpop.f32.mrf.mxu1  ;;  %v2018_v37 = vpop.f32.mrf.mxu0  ;;  %v777_v34 = vsel %vm775_vm9, %v1882_v33, 0 }
 0x232   : > { %v507_v38 = vpop.f32.mrf.mxu1  ;;  %v631_v39 = vpop.f32.mrf.mxu0 }
 0x233   : > { %v632_v41 = vadd.f32 %v631_v39, %v581_v35  ;;  %v508_v58 = vadd.f32 %v507_v38, %v453_v56 }
 0x234   : > { %v2003_v43 = vpop.f32.mrf.mxu1  ;;  %v2019_v44 = vpop.f32.mrf.mxu0 }
 0x235   : > { %v2447_v45 = vpack.c.bf16 %v632_v41, %v629_v40  ;;  %v2464_v60 = vpack.c.bf16 %v508_v58, %v505_v59 }
 0x236   : > { %v566_v46 = vpop.f32.mrf.mxu1 }
 0x237   : > { %v728_v48 = vsel %vm726_vm5, %v2447_v45, 0  ;;  %v567_v52 = vadd.f32 %v566_v46, %v519_v47 }
 0x238   : > { %v2010_v49 = vpop.f32.mrf.mxu1  ;;  %2027 = vmatpush3.bf16.msra.mxu0 %v728_v48 }
 0x239   : > { %2038 = vmatprep.subr.bf16.mxu0 %v2274_v1 }
 0x23a   : > { %v569_v50 = vpop.f32.mrf.mxu1 }
 0x23b   : > { %v570_v53 = vadd.f32 %v569_v50, %v519_v47 }
 0x23c   : > { %v2011_v54 = vpop.f32.mrf.mxu1 }
 0x23d   : > { %v2456_v55 = vpack.c.bf16 %v570_v53, %v567_v52 }
 0x23f   : > { %v655_v57 = vsel %vm650_vm6, %v2456_v55, 0 }
 0x240   : > { %2021 = vmatpush3.bf16.xpose.msra.mxu1 %v655_v57 }
 0x241   : > { %2032 = vmatprep.subr.bf16.mxu1 %v2274_v1 }
 0x247   : > { %2023 = vmatmul.mubr.msk.bf16.vlgmr.msra.gmra.mxu1 %vm650_vm6, %v2464_v60 }
 0x248   : > { %2034 = vmatprep.mubr.msk.bf16.mxu1 %vm2275_vm0, %v2274_v1  ;;  %2033 = vmatpush3.bf16.msra.mxu1 %v777_v34 }
 0x249   : > { %2044 = vmatprep.subr.bf16.mxu1 %v2274_v1 }
 0x307   : > { %v691_v62 = vpop.f32.mrf.mxu1 }
 0x308   : > { %v692_v63 = vadd.f32 %v691_v62, %v2473_v61 }
 0x309   : > { %v2024_v0 = vpop.f32.mrf.mxu1 }
 0x30a   : > { %v699_v3 = vsel %vm698_vm7, %v692_v63, -inf }
 0x30b   : > { %700 = vmax.xlane.f32.xlu1 %v699_v3  ;;  %v694_v4 = vpop.f32.mrf.mxu1 }
 0x30c   : > { %v695_v5 = vadd.f32 %v694_v4, %v2479_v2 }
 0x30d   : > { %v2025_v6 = vpop.f32.mrf.mxu1 }
 0x30e   : > { %v703_v7 = vsel %vm702_vm8, %v695_v5, -inf }
 0x30f   : > { %704 = vmax.xlane.f32.xlu1 %v703_v7 }
 0x394   : > { %v701_v8 = vpop.xlane.xlu1 %700 }
 0x395   : > { %v706_v9 = vsub.f32 %v692_v63, %v701_v8 }
 0x397   : > { %v708_v10 = vmul.f32 1.442695, %v706_v9 }
 0x398   : > { %v705_v11 = vpop.xlane.xlu1 %704 }
 0x399   : > { %2188 = vpow2.f32 %v708_v10  ;;  %v707_v12 = vsub.f32 %v695_v5, %v705_v11 }
 0x39b   : > { %v710_v13 = vmul.f32 1.442695, %v707_v12 }
 0x39d   : > { %2190 = vpow2.f32 %v710_v13 }
 0x3a6   : > { %v2189_v14 = vpop.eup %2188 }
 0x3a7   : > { %v712_v15 = vsel %vm698_vm7, %v2189_v14, 0.0 }
 0x3a8   : > { %713 = vadd.xlane.f32.xlu0 %v712_v15 }
 0x3aa   : > { %v2191_v16 = vpop.eup %2190 }
 0x3ab   : > { %v715_v17 = vsel %vm702_vm8, %v2191_v16, 0.0 }
 0x3ac   : > { %716 = vadd.xlane.f32.xlu1 %v715_v17 }
 0x3bd   : > { %826 = vrot.lane.b32.xlu1 %v2456_v55, %s2276_s14 }
 0x3c1   : > { %823 = vrot.lane.b32.xlu1 %v2464_v60, %s2276_s14 }
 0x431   : > { %v714_v18 = vpop.xlane.xlu0 %713 }
 0x432   : > { %2192 = vrcp.f32 %v714_v18  ;;  %v1883_v18 = vld [vmem:[%s2722_s4 + $0x34] sm:$0xf] }
 0x435   : > { %v717_v19 = vpop.xlane.xlu1 %716 }
 0x436   : > { %2194 = vrcp.f32 %v717_v19  ;;  %v953_v19 = vsel %vm775_vm9, %v1883_v18, 0 }
 0x439   : > { %v827_v26 = vpop.permute.xlu1 %826 }
 0x43a   : > { %v832_v28 = vsel %vm650_vm6, %v827_v26, 0 }
 0x43d   : > { %v824_v29 = vpop.permute.xlu1 %823 }
 0x43f   : > { %v2193_v20 = vpop.eup %2192 }
 0x440   : > { %v720_v22 = vmul.f32 %v2193_v20, %v2189_v14 }
 0x443   : > { %v2195_v21 = vpop.eup %2194 }
 0x444   : > { %v721_v23 = vmul.f32 %v2195_v21, %v2191_v16 }
 0x446   : > { %v722_v27 = vpack.c.bf16 %v721_v23, %v720_v22 }
 0x448   : > { %2029 = vmatmul.mubr.msk.bf16.vlgmr.msra.gmra.mxu0 %vm698_vm7, %v722_v27 }
 0x449   : > { %2039 = vmatpush3.bf16.xpose.msra.mxu0 %v832_v28  ;;  %2040 = vmatprep.mubr.msk.bf16.mxu0 %vm2275_vm0, %v2274_v1 }
 0x44a   : > { %2050 = vmatprep.subr.bf16.mxu0 %v2274_v1 }
 0x450   : > { %2041 = vmatmul.mubr.msk.bf16.vlgmr.msra.gmra.mxu0 %vm650_vm6, %v824_v29 }
 0x451   : > { %2052 = vmatprep.mubr.msk.bf16.mxu0 %vm2275_vm0, %v2274_v1  ;;  %2051 = vmatpush3.bf16.msra.mxu0 %v953_v19 }
 0x452   : > { %2062 = vmatprep.subr.bf16.mxu0 %v2274_v1 }
 0x508   : > { %v764_v35 = vpop.f32.mrf.mxu0 }
 0x50a   : > { %v2030_v36 = vpop.f32.mrf.mxu0 }
 0x50c   : > { %v767_v37 = vpop.f32.mrf.mxu0 }
 0x50d   : > { %v771_v38 = vpack.c.bf16 %v767_v37, %v764_v35 }
 0x50e   : > { %v2031_v39 = vpop.f32.mrf.mxu0 }
 0x50f   : > { %2035 = vmatmul.mubr.msk.bf16.vlgmr.msra.gmra.mxu1 %vm650_vm6, %v771_v38 }
 0x510   : > { %v868_v40 = vpop.f32.mrf.mxu0  ;;  %2046 = vmatprep.mubr.msk.bf16.mxu1 %vm2275_vm0, %v2274_v1 }
 0x511   : > { %v869_v41 = vadd.f32 %v868_v40, %v2473_v61 }
 0x512   : > { %v2042_v43 = vpop.f32.mrf.mxu0 }
 0x513   : > { %v875_v44 = vsel %vm698_vm7, %v869_v41, -inf }
 0x514   : > { %876 = vmax.xlane.f32.xlu1 %v875_v44  ;;  %v871_v46 = vpop.f32.mrf.mxu0 }
 0x515   : > { %v872_v47 = vadd.f32 %v871_v46, %v2479_v2 }
 0x516   : > { %v2043_v48 = vpop.f32.mrf.mxu0 }
 0x517   : > { %v878_v49 = vsel %vm702_vm8, %v872_v47, -inf }
 0x518   : > { %879 = vmax.xlane.f32.xlu0 %v878_v49 }
 0x525   : > { %1000 = vrot.lane.b32.xlu1 %v2456_v55, %s2277_s17 }
 0x59d   : > { %v877_v50 = vpop.xlane.xlu1 %876 }
 0x59e   : > { %v881_v52 = vsub.f32 %v869_v41, %v877_v50  ;;  %v644_v50 = vsub.s32 3, %v2438_v30 }
 0x5a0   : > { %v883_v53 = vmul.f32 1.442695, %v881_v52 }
 0x5a1   : > { %v880_v54 = vpop.xlane.xlu0 %879  ;;  %v1001_v14 = vpop.permute.xlu1 %1000 }
 0x5a2   : > { %2196 = vpow2.f32 %v883_v53  ;;  %v882_v56 = vsub.f32 %v872_v47, %v880_v54  ;;  %v1006_v16 = vsel %vm650_vm6, %v1001_v14, 0 }
 0x5a4   : > { %v885_v57 = vmul.f32 1.442695, %v882_v56 }
 0x5a6   : > { %2198 = vpow2.f32 %v885_v57 }
 0x5af   : > { %v2197_v58 = vpop.eup %2196 }
 0x5b0   : > { %v887_v59 = vsel %vm698_vm7, %v2197_v58, 0.0 }
 0x5b1   : > { %888 = vadd.xlane.f32.xlu0 %v887_v59 }
 0x5b3   : > { %v2199_v62 = vpop.eup %2198 }
 0x5b4   : > { %v890_v63 = vsel %vm702_vm8, %v2199_v62, 0.0 }
 0x5b5   : > { %891 = vadd.xlane.f32.xlu0 %v890_v63 }
 0x5cb   : > { %899 = vrot.lane.b32.xlu0 %v2447_v45, %s2276_s14 }
 0x5cf   : > { %998 = vrot.lane.b32.xlu0 %v2464_v60, %s2277_s17  ;;  %v2518_v0 = vpop.f32.mrf.mxu1 }
 0x5d1   : > { %v2036_v3 = vpop.f32.mrf.mxu1 }
 0x5d3   : > { %v2520_v4 = vpop.f32.mrf.mxu1 }
 0x5d5   : > { %v2037_v5 = vpop.f32.mrf.mxu1 }
 0x63a   : > { %v889_v6 = vpop.xlane.xlu0 %888 }
 0x63b   : > { %2200 = vrcp.f32 %v889_v6 }
 0x63e   : > { %v892_v7 = vpop.xlane.xlu0 %891 }
 0x63f   : > { %2202 = vrcp.f32 %v892_v7 }
 0x642   : > { %v900_v8 = vpop.permute.xlu0 %899 }
 0x643   : > { %v905_v9 = vsel %vm726_vm5, %v900_v8, 0 }
 0x644   : > { %2045 = vmatpush3.bf16.msra.mxu1 %v905_v9 }
 0x645   : > { %2056 = vmatprep.subr.bf16.mxu1 %v2274_v1 }
 0x646   : > { %v999_v17 = vpop.permute.xlu0 %998 }
 0x648   : > { %v2201_v10 = vpop.eup %2200 }
 0x649   : > { %v895_v12 = vmul.f32 %v2201_v10, %v2197_v58 }
 0x64c   : > { %v2203_v11 = vpop.eup %2202 }
 0x64d   : > { %v896_v13 = vmul.f32 %v2203_v11, %v2199_v62 }
 0x64f   : > { %v897_v15 = vpack.c.bf16 %v896_v13, %v895_v12  ;;  %v1884_v12 = vld [vmem:[%s2722_s4 + $0x38] sm:$0xf] }
 0x650   : > { %v1126_v13 = vsel %vm775_vm9, %v1884_v12, 0 }
 0x651   : > { %2047 = vmatmul.mubr.msk.bf16.vlgmr.msra.gmra.mxu1 %vm698_vm7, %v897_v15 }
 0x652   : > { %2057 = vmatpush3.bf16.xpose.msra.mxu1 %v1006_v16  ;;  %2058 = vmatprep.mubr.msk.bf16.mxu1 %vm2275_vm0, %v2274_v1 }
 0x653   : > { %2068 = vmatprep.subr.bf16.mxu1 %v2274_v1 }
 0x659   : > { %2059 = vmatmul.mubr.msk.bf16.vlgmr.msra.gmra.mxu1 %vm650_vm6, %v999_v17 }
 0x65a   : > { %2070 = vmatprep.mubr.msk.bf16.mxu1 %vm2275_vm0, %v2274_v1  ;;  %2069 = vmatpush3.bf16.msra.mxu1 %v1126_v13 }
 0x65b   : > { %2080 = vmatprep.subr.bf16.mxu1 %v2274_v1 }
 0x711   : > { %v941_v20 = vpop.f32.mrf.mxu1 }
 0x713   : > { %v2048_v21 = vpop.f32.mrf.mxu1 }
 0x715   : > { %v944_v22 = vpop.f32.mrf.mxu1 }
 0x716   : > { %v948_v23 = vpack.c.bf16 %v944_v22, %v941_v20 }
 0x717   : > { %v2049_v26 = vpop.f32.mrf.mxu1 }
 0x718   : > { %2053 = vmatmul.mubr.msk.bf16.vlgmr.msra.gmra.mxu0 %vm650_vm6, %v948_v23 }
 0x719   : > { %v1042_v27 = vpop.f32.mrf.mxu1  ;;  %2064 = vmatprep.mubr.msk.bf16.mxu0 %vm2275_vm0, %v2274_v1 }
 0x71a   : > { %v1043_v28 = vadd.f32 %v1042_v27, %v2473_v61 }
 0x71b   : > { %v2060_v29 = vpop.f32.mrf.mxu1 }
 0x71c   : > { %v1049_v33 = vsel %vm698_vm7, %v1043_v28, -inf }
 0x71d   : > { %1050 = vmax.xlane.f32.xlu0 %v1049_v33  ;;  %v1045_v34 = vpop.f32.mrf.mxu1 }
 0x71e   : > { %v1046_v35 = vadd.f32 %v1045_v34, %v2479_v2 }
 0x71f   : > { %v2061_v36 = vpop.f32.mrf.mxu1 }
 0x720   : > { %v1052_v37 = vsel %vm702_vm8, %v1046_v35, -inf }
 0x721   : > { %1053 = vmax.xlane.f32.xlu1 %v1052_v37 }
 0x732   : > { %1173 = vrot.lane.b32.xlu1 %v2456_v55, %s2278_s21  ;;  %v645_v55 = vrot.slane %v2441_v32, %v644_v50 }
 0x734   : > { %v820_v52 = vadd.f32 %v2518_v0, %v645_v55  ;;  %v821_v57 = vadd.f32 %v2520_v4, %v645_v55 }
 0x7a6   : > { %v1051_v38 = vpop.xlane.xlu0 %1050 }
 0x7a7   : > { %v1055_v39 = vsub.f32 %v1043_v28, %v1051_v38 }
 0x7a9   : > { %v1057_v40 = vmul.f32 1.442695, %v1055_v39 }
 0x7aa   : > { %v1054_v41 = vpop.xlane.xlu1 %1053 }
 0x7ab   : > { %2204 = vpow2.f32 %v1057_v40  ;;  %v1056_v43 = vsub.f32 %v1046_v35, %v1054_v41 }
 0x7ad   : > { %v1059_v44 = vmul.f32 1.442695, %v1056_v43 }
 0x7ae   : > { %v1174_v9 = vpop.permute.xlu1 %1173 }
 0x7af   : > { %2206 = vpow2.f32 %v1059_v44  ;;  %v1179_v10 = vsel %vm650_vm6, %v1174_v9, 0 }
 0x7b8   : > { %v2205_v46 = vpop.eup %2204 }
 0x7b9   : > { %v1061_v47 = vsel %vm698_vm7, %v2205_v46, 0.0 }
 0x7ba   : > { %1062 = vadd.xlane.f32.xlu0 %v1061_v47 }
 0x7bc   : > { %v2207_v48 = vpop.eup %2206 }
 0x7bd   : > { %v1064_v49 = vsel %vm702_vm8, %v2207_v48, 0.0 }
 0x7be   : > { %1065 = vadd.xlane.f32.xlu0 %v1064_v49 }
 0x7d4   : > { %1072 = vrot.lane.b32.xlu0 %v2447_v45, %s2277_s17 }
 0x7d8   : > { %v989_v53 = vpop.f32.mrf.mxu0  ;;  %1171 = vrot.lane.b32.xlu0 %v2464_v60, %s2278_s21 }
 0x7d9   : > { %v2557_v54 = vadd.f32 %v989_v53, %v820_v52 }
 0x7da   : > { %v2054_v56 = vpop.f32.mrf.mxu0 }
 0x7dc   : > { %v992_v58 = vpop.f32.mrf.mxu0 }
 0x7dd   : > { %v2560_v59 = vadd.f32 %v992_v58, %v821_v57  ;;  %v1885_v58 = vld [vmem:[%s2722_s4 + $0x3c] sm:$0xf] }
 0x7de   : > { %v2055_v62 = vpop.f32.mrf.mxu0 }
 0x843   : > { %v1063_v63 = vpop.xlane.xlu0 %1062 }
 0x844   : > { %2208 = vrcp.f32 %v1063_v63 }
 0x847   : > { %v1066_v3 = vpop.xlane.xlu0 %1065 }
 0x848   : > { %2210 = vrcp.f32 %v1066_v3 }
 0x84b   : > { %v1073_v5 = vpop.permute.xlu0 %1072 }
 0x84c   : > { %v1078_v0 = vsel %vm726_vm5, %v1073_v5, 0 }
 0x84d   : > { %2063 = vmatpush3.bf16.msra.mxu0 %v1078_v0 }
 0x84e   : > { %2074 = vmatprep.subr.bf16.mxu0 %v2274_v1 }
 0x84f   : > { %v1172_v11 = vpop.permute.xlu0 %1171 }
 0x851   : > { %v2209_v60 = vpop.eup %2208 }
 0x852   : > { %v1069_v7 = vmul.f32 %v2209_v60, %v2205_v46 }
 0x855   : > { %v2211_v6 = vpop.eup %2210 }
 0x856   : > { %v1070_v8 = vmul.f32 %v2211_v6, %v2207_v48 }
 0x858   : > { %v1071_v4 = vpack.c.bf16 %v1070_v8, %v1069_v7 }
 0x85a   : > { %2065 = vmatmul.mubr.msk.bf16.vlgmr.msra.gmra.mxu0 %vm698_vm7, %v1071_v4 }
 0x85b   : > { %2075 = vmatpush3.bf16.xpose.msra.mxu0 %v1179_v10  ;;  %2076 = vmatprep.mubr.msk.bf16.mxu0 %vm2275_vm0, %v2274_v1 }
 0x85c   : > { %2086 = vmatprep.subr.bf16.mxu0 %v2274_v1 }
 0x862   : > { %2077 = vmatmul.mubr.msk.bf16.vlgmr.msra.gmra.mxu0 %vm650_vm6, %v1172_v11 }
 0x863   : > { %2088 = vmatprep.mubr.msk.bf16.mxu0 %vm2275_vm0, %v2274_v1 }
 0x91a   : > { %v1114_v14 = vpop.f32.mrf.mxu0 }
 0x91c   : > { %v2066_v15 = vpop.f32.mrf.mxu0 }
 0x91e   : > { %v1117_v16 = vpop.f32.mrf.mxu0 }
 0x91f   : > { %v1121_v17 = vpack.c.bf16 %v1117_v16, %v1114_v14 }
 0x920   : > { %v2067_v18 = vpop.f32.mrf.mxu0 }
 0x921   : > { %2071 = vmatmul.mubr.msk.bf16.vlgmr.msra.gmra.mxu1 %vm650_vm6, %v1121_v17 }
 0x922   : > { %v1215_v19 = vpop.f32.mrf.mxu0  ;;  %2082 = vmatprep.mubr.msk.bf16.mxu1 %vm2275_vm0, %v2274_v1 }
 0x923   : > { %v1216_v20 = vadd.f32 %v1215_v19, %v2473_v61 }
 0x924   : > { %v2078_v21 = vpop.f32.mrf.mxu0 }
 0x925   : > { %v1222_v22 = vsel %vm698_vm7, %v1216_v20, -inf }
 0x926   : > { %1223 = vmax.xlane.f32.xlu1 %v1222_v22  ;;  %v1218_v23 = vpop.f32.mrf.mxu0 }
 0x927   : > { %v1219_v26 = vadd.f32 %v1218_v23, %v2479_v2  ;;  %v2175_v23 = vld [vmem:[%s2722_s4 + $0x40] sm:$0xff]  }
 0x928   : > { %v2079_v27 = vpop.f32.mrf.mxu0 }
 0x929   : > { %v1225_v28 = vsel %vm702_vm8, %v1219_v26, -inf }
 0x92a   : > { %1226 = vmax.xlane.f32.xlu0 %v1225_v28 }
 0x9af   : > { %v1224_v29 = vpop.xlane.xlu1 %1223 }
 0x9b0   : > { %v1228_v33 = vsub.f32 %v1216_v20, %v1224_v29 }
 0x9b2   : > { %v1230_v34 = vmul.f32 1.442695, %v1228_v33 }
 0x9b3   : > { %v1227_v35 = vpop.xlane.xlu0 %1226 }
 0x9b4   : > { %2212 = vpow2.f32 %v1230_v34  ;;  %v1229_v36 = vsub.f32 %v1219_v26, %v1227_v35  ;;  %v1376_v35 = vsub.s32 7, %v2438_v30 }
 0x9b6   : > { %v1232_v37 = vmul.f32 1.442695, %v1229_v36 }
 0x9b8   : > { %2214 = vpow2.f32 %v1232_v37 }
 0x9c1   : > { %v2213_v61 = vpop.eup %2212 }
 0x9c2   : > { %v1234_v38 = vsel %vm698_vm7, %v2213_v61, 0.0 }
 0x9c3   : > { %1235 = vadd.xlane.f32.xlu0 %v1234_v38  ;;  %v2619_v38 = vld [vmem:[#allocation2 + $0x8] sm:$0x1f] }
 0x9c5   : > { %v2215_v39 = vpop.eup %2214 }
 0x9c6   : > { %v1237_v40 = vsel %vm702_vm8, %v2215_v39, 0.0 }
 0x9c7   : > { %1238 = vadd.xlane.f32.xlu1 %v1237_v40  ;;  %v1383_v40 = vrot.slane %v2619_v38, %v452_v51  ;;  %v2177_v51 = vld [vmem:[%s2722_s4 + $0x50] sm:$0xff]  }
 0x9d9   : > { %1245 = vrot.lane.b32.xlu0 %v2447_v45, %s2278_s21 }
 0x9e1   : > { %v1162_v2 = vpop.f32.mrf.mxu1 }
 0x9e2   : > { %v1169_v41 = vadd.f32 %v1162_v2, %v2557_v54 }
 0x9e3   : > { %v2072_v43 = vpop.f32.mrf.mxu1 }
 0x9e5   : > { %v1165_v44 = vpop.f32.mrf.mxu1 }
 0x9e6   : > { %v1170_v46 = vadd.f32 %v1165_v44, %v2560_v59  ;;  %v1299_v59 = vsel %vm775_vm9, %v1885_v58, 0 }
 0x9e7   : > { %v2073_v47 = vpop.f32.mrf.mxu1  ;;  %2087 = vmatpush3.bf16.msra.mxu0 %v1299_v59 }
 0x9e8   : > { %2100 = vmatprep.subr.bf16.mxu0 %v2274_v1 }
 0xa4c   : > { %v1236_v48 = vpop.xlane.xlu0 %1235 }
 0xa4d   : > { %2216 = vrcp.f32 %v1236_v48  ;;  %v2176_v48 = vld [vmem:[%s2722_s4 + $0x58] sm:$0xff]  }
 0xa50   : > { %v1239_v49 = vpop.xlane.xlu1 %1238  ;;  %v1246_v55 = vpop.permute.xlu0 %1245 }
 0xa51   : > { %2218 = vrcp.f32 %v1239_v49  ;;  %v1251_v52 = vsel %vm726_vm5, %v1246_v55, 0  ;;  %v1394_v49 = vsub.s32 4, %v2438_v30 }
 0xa52   : > { %2081 = vmatpush3.bf16.msra.mxu1 %v1251_v52 }
 0xa53   : > { %2092 = vmatprep.subr.bf16.mxu1 %v2274_v1  ;;  %v1395_v55 = vrot.slane %v2441_v32, %v1394_v49 }
 0xa5a   : > { %v2217_v53 = vpop.eup %2216 }
 0xa5b   : > { %v1242_v56 = vmul.f32 %v2217_v53, %v2213_v61  ;;  %v1377_v61 = vrot.slane %v2441_v32, %v1376_v35 }
 0xa5e   : > { %v2219_v45 = vpop.eup %2218 }
 0xa5f   : > { %v1243_v57 = vmul.f32 %v2219_v45, %v2215_v39 }
 0xa61   : > { %v1244_v54 = vpack.c.bf16 %v1243_v57, %v1242_v56 }
 0xa63   : > { %2083 = vmatmul.mubr.msk.bf16.vlgmr.msra.gmra.mxu1 %vm698_vm7, %v1244_v54 }
 0xa64   : > { %2096 = vmatprep.mubr.msk.bf16.mxu1 %vm2275_vm0, %v2274_v1 }
 0xb23   : > { %v1287_v62 = vpop.f32.mrf.mxu1 }
 0xb25   : > { %v2084_v63 = vpop.f32.mrf.mxu1 }
 0xb26   : > { %v1462_v63 = vsub.s32 5, %v2438_v30 }
 0xb27   : > { %v1290_v3 = vpop.f32.mrf.mxu1 }
 0xb28   : > { %v1294_v5 = vpack.c.bf16 %v1290_v3, %v1287_v62  ;;  %v1463_v3 = vrot.slane %v2441_v32, %v1462_v63 }
 0xb29   : > { %v2085_v0 = vpop.f32.mrf.mxu1 }
 0xb2a   : > { %2089 = vmatmul.mubr.msk.bf16.vlgmr.msra.gmra.mxu0 %vm650_vm6, %v1294_v5 }
 0xb2b   : > { %2104 = vmatprep.mubr.msk.bf16.mxu0 %vm2275_vm0, %v2274_v1  ;;  %2101 = vmatpush3.bf16.msra.mxu0 %v2176_v48 }
 0xb2c   : > { %2102 = vmatprep.subr.bf16.mxu0 %v2274_v1 }
 0xb2f   : > { %2103 = vmatpush3.bf16.msra.mxu0 %v2177_v51 }
 0xb30   : > { %2116 = vmatprep.subr.bf16.mxu0 %v2274_v1 }
 0xbea   : > { %v1335_v60 = vpop.f32.mrf.mxu0 }
 0xbeb   : > { %v1342_v6 = vadd.f32 %v1335_v60, %v1169_v41 }
 0xbec   : > { %v2090_v7 = vpop.f32.mrf.mxu0 }
 0xbed   : > { %v1344_v8 = vadd.f32 %v1342_v6, %v2415_v24 }
 0xbee   : > { %v1338_v9 = vpop.f32.mrf.mxu0 }
 0xbef   : > { %v1343_v4 = vadd.f32 %v1338_v9, %v1170_v46  ;;  %v1346_v10 = vsel %vm466_vm4, %v1344_v8, 0.0 }
 0xbf0   : > { %1347 = vadd.xlane.f32.xlu1 %v1346_v10  ;;  %v2091_v11 = vpop.f32.mrf.mxu0 }
 0xbf1   : > { %v1345_v12 = vadd.f32 %v1343_v4, %v2417_v25  ;;  %v2174_v25 = vld [vmem:[%s2722_s4 + $0x48] sm:$0xff]  }
 0xbf2   : > { %2093 = vmatpush3.bf16.msra.mxu1 %v2174_v25  ;;  %v2180_v25 = vld [vmem:[%s2724_s6 + $0x38] sm:$0xff]  }
 0xbf3   : > { %v1350_v13 = vsel %vm1349_vm10, %v1345_v12, 0.0  ;;  %2094 = vmatprep.subr.bf16.mxu1 %v2274_v1 }
 0xbf4   : > { %1351 = vadd.xlane.f32.xlu1 %v1350_v13 }
 0xbf6   : > { %2095 = vmatpush3.bf16.msra.mxu1 %v2175_v23  ;;  %v2181_v23 = vld [vmem:[%s2724_s6 + $0x30] sm:$0xff]  }
 0xbf7   : > { %2108 = vmatprep.subr.bf16.mxu1 %v2274_v1 }
 0xc79   : > { %v1348_v14 = vpop.xlane.xlu1 %1347 }
 0xc7a   : > { %v1354_v15 = vmul.f32 0.03125, %v1348_v14 }
 0xc7c   : > { %v1356_v16 = vsub.f32 %v1344_v8, %v1354_v15 }
 0xc7d   : > { %v1352_v17 = vpop.xlane.xlu1 %1351 }
 0xc7e   : > { %v1355_v18 = vmul.f32 0.03125, %v1352_v17  ;;  %v1358_v19 = vmul.f32 %v1356_v16, %v1356_v16 }
 0xc80   : > { %v1357_v20 = vsub.f32 %v1345_v12, %v1355_v18  ;;  %v1360_v24 = vsel %vm466_vm4, %v1358_v19, 0.0 }
 0xc81   : > { %1361 = vadd.xlane.f32.xlu1 %v1360_v24 }
 0xc82   : > { %v1359_v21 = vmul.f32 %v1357_v20, %v1357_v20 }
 0xc84   : > { %v1363_v22 = vsel %vm1349_vm10, %v1359_v21, 0.0  ;;  %v2178_v21 = vld [vmem:[%s2723_s5 + $0x8] sm:$0xff]  }
 0xc85   : > { %1364 = vadd.xlane.f32.xlu1 %v1363_v22  ;;  %v2179_v22 = vld [vmem:[%s2723_s5] sm:$0xff]  }
 0xd0a   : > { %v1362_v26 = vpop.xlane.xlu1 %1361 }
 0xd0b   : > { %v1366_v27 = vmul.f32 0.03125, %v1362_v26  ;;  %v2182_v26 = vld [vmem:[%s2724_s6 + $0x28] sm:$0xff]  }
 0xd0d   : > { %v1368_v28 = vadd.f32 1e-05, %v1366_v27  ;;  %v2183_v27 = vld [vmem:[%s2724_s6 + $0x20] sm:$0xff]  }
 0xd0e   : > { %v1365_v29 = vpop.xlane.xlu1 %1364 }
 0xd0f   : > { %2220 = vrsqrt.f32 %v1368_v28  ;;  %v1367_v33 = vmul.f32 0.03125, %v1365_v29  ;;  %v2184_v28 = vld [vmem:[%s2724_s6 + $0x18] sm:$0xff]  }
 0xd11   : > { %v1369_v34 = vadd.f32 1e-05, %v1367_v33 }
 0xd13   : > { %2222 = vrsqrt.f32 %v1369_v34 }
 0xd1c   : > { %v2221_v36 = vpop.eup %2220 }
 0xd1d   : > { %v1372_v37 = vmul.f32 %v2221_v36, %v1356_v16 }
 0xd1f   : > { %v1378_v41 = vmul.f32 %v1377_v61, %v1372_v37 }
 0xd20   : > { %v2223_v39 = vpop.eup %2222 }
 0xd21   : > { %v1373_v2 = vmul.f32 %v2223_v39, %v1357_v20  ;;  %v1384_v44 = vadd.f32 %v1383_v40, %v1378_v41 }
 0xd23   : > { %v1379_v43 = vmul.f32 %v1377_v61, %v1373_v2  ;;  %v1551_v61 = vrot.slane %v2619_v38, %v518_v42  ;;  %v2187_v42 = vld [vmem:[%s2724_s6] sm:$0xff]  }
 0xd25   : > { %v1385_v46 = vadd.f32 %v1383_v40, %v1379_v43  ;;  %v1557_v40 = vrot.slane %v2619_v38, %v580_v31  ;;  %v2186_v31 = vld [vmem:[%s2724_s6 + $0x8] sm:$0xff]  }
 0xd27   : > { %v1386_v47 = vpack.c.bf16 %v1385_v46, %v1384_v44 }
 0xd29   : > { %2097 = vmatmul.mubr.msk.bf16.vlgmr.msra.gmra.mxu1 %vm466_vm4, %v1386_v47 }
 0xd2a   : > { %2112 = vmatprep.mubr.msk.bf16.mxu1 %vm2275_vm0, %v2274_v1  ;;  %2109 = vmatpush3.bf16.msra.mxu1 %v2178_v21 }
 0xd2b   : > { %2110 = vmatprep.subr.bf16.mxu1 %v2274_v1 }
 0xd2e   : > { %2111 = vmatpush3.bf16.msra.mxu1 %v2179_v22 }
 0xde9   : > { %v1445_v52 = vpop.f32.mrf.mxu1 }
 0xdea   : > { %v1446_v45 = vadd.f32 %v1445_v52, %v1395_v55  ;;  %v1912_v52 = vld [vmem:[%s2726_s8] ss:$0 sm:$0xff] }
 0xdeb   : > { %v2098_v53 = vpop.f32.mrf.mxu1 }
 0xdec   : > { %v1452_v58 = vmax.f32 %v1446_v45, 0.0 }
 0xded   : > { %v1448_v56 = vpop.f32.mrf.mxu1 }
 0xdee   : > { %v1449_v57 = vadd.f32 %v1448_v56, %v1395_v55  ;;  %v2185_v55 = vld [vmem:[%s2724_s6 + $0x10] sm:$0xff]  }
 0xdef   : > { %v2099_v54 = vpop.f32.mrf.mxu1 }
 0xdf0   : > { %v1453_v59 = vmax.f32 %v1449_v57, 0.0 }
 0xdf2   : > { %v1454_v62 = vpack.c.bf16 %v1453_v59, %v1452_v58 }
 0xdf4   : > { %2105 = vmatmul.mubr.msk.bf16.vlgmr.msra.gmra.mxu0 %vm466_vm4, %v1454_v62 }
 0xdf5   : > { %2132 = vmatprep.mubr.msk.bf16.mxu0 %vm2275_vm0, %v2274_v1  ;;  %2117 = vmatpush3.bf16.msra.mxu0 %v2180_v25 }
 0xdf6   : > { %2118 = vmatprep.subr.bf16.mxu0 %v2274_v1 }
 0xdf9   : > { %2119 = vmatpush3.bf16.msra.mxu0 %v2181_v23 }
 0xdfa   : > { %2120 = vmatprep.subr.bf16.mxu0 %v2274_v1 }
 0xdfd   : > { %2121 = vmatpush3.bf16.msra.mxu0 %v2182_v26 }
 0xdfe   : > { %2122 = vmatprep.subr.bf16.mxu0 %v2274_v1 }
 0xe01   : > { %2123 = vmatpush3.bf16.msra.mxu0 %v2183_v27  ;;  %v1771_v27 = vrot.slane %v2619_v38, %v644_v50 }
 0xe02   : > { %2124 = vmatprep.subr.bf16.mxu0 %v2274_v1 }
 0xe05   : > { %2125 = vmatpush3.bf16.msra.mxu0 %v2184_v28 }
 0xe06   : > { %2126 = vmatprep.subr.bf16.mxu0 %v2274_v1 }
 0xe09   : > { %2127 = vmatpush3.bf16.msra.mxu0 %v2185_v55 }
 0xe0a   : > { %2128 = vmatprep.subr.bf16.mxu0 %v2274_v1 }
 0xe0d   : > { %2129 = vmatpush3.bf16.msra.mxu0 %v2186_v31 }
 0xe0e   : > { %2130 = vmatprep.subr.bf16.mxu0 %v2274_v1  ;;  %v1649_v1 = vsub.s32 6, %v2438_v30 }
 0xe11   : > { %2131 = vmatpush3.bf16.msra.mxu0 %v2187_v42 }
 0xeb4   : > { %v1513_v5 = vpop.f32.mrf.mxu0 }
 0xeb5   : > { %v1514_v0 = vadd.f32 %v1513_v5, %v1463_v3 }
 0xeb6   : > { %v2106_v60 = vpop.f32.mrf.mxu0 }
 0xeb7   : > { %v1520_v6 = vadd.f32 %v1514_v0, %v1384_v44 }
 0xeb8   : > { %v1516_v7 = vpop.f32.mrf.mxu0 }
 0xeb9   : > { %v1517_v8 = vadd.f32 %v1516_v7, %v1463_v3  ;;  %v1522_v9 = vsel %vm466_vm4, %v1520_v6, 0.0  ;;  %v1650_v3 = vrot.slane %v2441_v32, %v1649_v1 }
 0xeba   : > { %1523 = vadd.xlane.f32.xlu1 %v1522_v9  ;;  %v2107_v4 = vpop.f32.mrf.mxu0 }
 0xebb   : > { %v1521_v10 = vadd.f32 %v1517_v8, %v1385_v46 }
 0xebd   : > { %v1525_v11 = vsel %vm1349_vm10, %v1521_v10, 0.0 }
 0xebe   : > { %1526 = vadd.xlane.f32.xlu0 %v1525_v11 }
 0xf43   : > { %v1524_v12 = vpop.xlane.xlu1 %1523 }
 0xf44   : > { %v1528_v13 = vmul.f32 0.03125, %v1524_v12 }
 0xf46   : > { %v1530_v14 = vsub.f32 %v1520_v6, %v1528_v13 }
 0xf47   : > { %v1527_v15 = vpop.xlane.xlu0 %1526 }
 0xf48   : > { %v1529_v16 = vmul.f32 0.03125, %v1527_v15  ;;  %v1532_v17 = vmul.f32 %v1530_v14, %v1530_v14 }
 0xf4a   : > { %v1531_v18 = vsub.f32 %v1521_v10, %v1529_v16  ;;  %v1534_v19 = vsel %vm466_vm4, %v1532_v17, 0.0 }
 0xf4b   : > { %1535 = vadd.xlane.f32.xlu1 %v1534_v19 }
 0xf4c   : > { %v1533_v20 = vmul.f32 %v1531_v18, %v1531_v18 }
 0xf4e   : > { %v1537_v24 = vsel %vm1349_vm10, %v1533_v20, 0.0 }
 0xf4f   : > { %1538 = vadd.xlane.f32.xlu1 %v1537_v24 }
 0xfd4   : > { %v1536_v29 = vpop.xlane.xlu1 %1535 }
 0xfd5   : > { %v1540_v33 = vmul.f32 0.03125, %v1536_v29  ;;  %v1777_v29 = vrot.slane %v2619_v38, %v1394_v49 }
 0xfd7   : > { %v1542_v34 = vadd.f32 1e-05, %v1540_v33 }
 0xfd8   : > { %v1539_v35 = vpop.xlane.xlu1 %1538 }
 0xfd9   : > { %2224 = vrsqrt.f32 %v1542_v34  ;;  %v1541_v36 = vmul.f32 0.03125, %v1539_v35 }
 0xfdb   : > { %v1543_v37 = vadd.f32 1e-05, %v1541_v36 }
 0xfdd   : > { %2226 = vrsqrt.f32 %v1543_v37 }
 0xfe6   : > { %v2225_v39 = vpop.eup %2224 }
 0xfe7   : > { %v1546_v2 = vmul.f32 %v2225_v39, %v1530_v14 }
 0xfe9   : > { %v1552_v41 = vmul.f32 %v1551_v61, %v1546_v2 }
 0xfea   : > { %v2227_v43 = vpop.eup %2226 }
 0xfeb   : > { %v1547_v44 = vmul.f32 %v2227_v43, %v1531_v18  ;;  %v1558_v46 = vadd.f32 %v1557_v40, %v1552_v41 }
 0xfed   : > { %v1553_v47 = vmul.f32 %v1551_v61, %v1547_v44 }
 0xfef   : > { %v1559_v48 = vadd.f32 %v1557_v40, %v1553_v47 }
 0xff1   : > { %v1560_v51 = vpack.c.bf16 %v1559_v48, %v1558_v46 }
 0xff3   : > { %2113 = vmatmul.mubr.msk.bf16.vlgmr.msra.gmra.mxu1 %vm466_vm4, %v1560_v51 }
0x10b3   : > { %v1621_v53 = vpop.f32.mrf.mxu1 }
0x10b4   : > { %v1622_v56 = vadd.f32 %v1912_v52, %v1621_v53 }
0x10b5   : > { %v2114_v45 = vpop.f32.mrf.mxu1 }
0x10b6   : > { %v1628_v59 = vmax.f32 %v1622_v56, 0.0 }
0x10b7   : > { %v1624_v57 = vpop.f32.mrf.mxu1 }
0x10b8   : > { %v1625_v54 = vadd.f32 %v1912_v52, %v1624_v57 }
0x10b9   : > { %v2115_v58 = vpop.f32.mrf.mxu1 }
0x10ba   : > { %v1629_v62 = vmax.f32 %v1625_v54, 0.0 }
0x10bc   : > { %v1630_v63 = vpack.c.bf16 %v1629_v62, %v1628_v59 }
0x10be   : > { %2133 = vmatmul.mubr.bf16.vlgmr.msra.gmra.mxu0 %v1630_v63 }
0x117e   : > { %v1733_v5 = vpop.f32.mrf.mxu0 }
0x117f   : > { %v1734_v0 = vadd.f32 %v1733_v5, %v1650_v3 }
0x1180   : > { %v2134_v60 = vpop.f32.mrf.mxu0 }
0x1181   : > { %v1740_v6 = vadd.f32 %v1734_v0, %v1558_v46 }
0x1182   : > { %v1736_v7 = vpop.f32.mrf.mxu0 }
0x1183   : > { %v1737_v8 = vadd.f32 %v1736_v7, %v1650_v3  ;;  %v1742_v9 = vsel %vm466_vm4, %v1740_v6, 0.0 }
0x1184   : > { %1743 = vadd.xlane.f32.xlu1 %v1742_v9  ;;  %v2135_v4 = vpop.f32.mrf.mxu0 }
0x1185   : > { %v1741_v10 = vadd.f32 %v1737_v8, %v1559_v48 }
0x1187   : > { %v1745_v11 = vsel %vm1349_vm10, %v1741_v10, 0.0 }
0x1188   : > { %1746 = vadd.xlane.f32.xlu1 %v1745_v11 }
0x120d   : > { %v1744_v12 = vpop.xlane.xlu1 %1743 }
0x120e   : > { %v1748_v13 = vmul.f32 0.03125, %v1744_v12 }
0x1210   : > { %v1750_v14 = vsub.f32 %v1740_v6, %v1748_v13 }
0x1211   : > { %v1747_v15 = vpop.xlane.xlu1 %1746 }
0x1212   : > { %v1749_v16 = vmul.f32 0.03125, %v1747_v15  ;;  %v1752_v32 = vmul.f32 %v1750_v14, %v1750_v14 }
0x1214   : > { %v1751_v17 = vsub.f32 %v1741_v10, %v1749_v16  ;;  %v1754_v18 = vsel %vm466_vm4, %v1752_v32, 0.0 }
0x1215   : > { %1755 = vadd.xlane.f32.xlu1 %v1754_v18 }
0x1216   : > { %v1753_v19 = vmul.f32 %v1751_v17, %v1751_v17 }
0x1218   : > { %v1757_v20 = vsel %vm1349_vm10, %v1753_v19, 0.0 }
0x1219   : > { %1758 = vadd.xlane.f32.xlu1 %v1757_v20 }
0x129e   : > { %v1756_v24 = vpop.xlane.xlu1 %1755 }
0x129f   : > { %v1760_v21 = vmul.f32 0.03125, %v1756_v24 }
0x12a1   : > { %v1762_v22 = vadd.f32 1e-05, %v1760_v21 }
0x12a2   : > { %v1759_v25 = vpop.xlane.xlu1 %1758 }
0x12a3   : > { %2228 = vrsqrt.f32 %v1762_v22  ;;  %v1761_v23 = vmul.f32 0.03125, %v1759_v25 }
0x12a5   : > { %v1763_v26 = vadd.f32 1e-05, %v1761_v23 }
0x12a7   : > { %2230 = vrsqrt.f32 %v1763_v26 }
0x12b0   : > { %v2229_v28 = vpop.eup %2228 }
0x12b1   : > { %v1766_v33 = vmul.f32 %v2229_v28, %v1750_v14 }
0x12b3   : > { %v1772_v34 = vmul.f32 %v1771_v27, %v1766_v33 }
0x12b4   : > { %v2231_v35 = vpop.eup %2230 }
0x12b5   : > { %v1778_v36 = vadd.f32 %v1777_v29, %v1772_v34  ;;  %v1767_v37 = vmul.f32 %v2231_v35, %v1751_v17 }
0x12b7   : > { %1780 = vst.msk [vmem:[%s347_s22] sm:$0xff] %vm466_vm4, %v1778_v36  ;;  %v1773_v61 = vmul.f32 %v1771_v27, %v1767_v37 }
0x12b9   : > { %v1779_v39 = vadd.f32 %v1777_v29, %v1773_v61 }
0x12bb   : > { %1781 = vst.msk [vmem:[%s347_s22 + $0x8] sm:$0x3] %vm1349_vm10, %v1779_v39 }
0x12bc PF: > { %s20_s30 = sadd.s32 1, %s2268_s30  }
0x12bd   : > { %p17_p1 = scmp.ge.s32.totalorder %s20_s30, 4  }
0x12bf   :  { %19 = sbr.rel (!%p17_p1) target bundleno = 1 (0x1), region = 96 }
0x12c4   :  { %1803 = vsyncpa [#allocation3], 1 }
0x12c5   :  { %1805 = vsyncpa [#allocation3 + $0x1], 1 }

</bundles_post_ra>
